<compile_context>
chip_gen: v7x
topology: tpu7x:2x2x1
jax: 0.10.0
libtpu: 0.0.40
codegen_flags: <defaults>
</compile_context>

<pallas_src>
import functools

import jax
import jax.numpy as jnp
from jax.experimental import pallas as pl
from jax.experimental.pallas import tpu as pltpu


def _round_up(n, m):
    return ((n + m - 1) // m) * m


# ---------------------------------------------------------------------------
# Generation-aware budgets.
# ---------------------------------------------------------------------------
_LIVE_VREG_BUDGET = 160 * 1024  # accumulators + live operand slices (vreg file ~256 KiB)


@functools.lru_cache(maxsize=1)
def _budgets():
    """(block_vmem_budget_bytes, vmem_limit_bytes), derived from the chip."""
    try:
        cap = int(pltpu.get_tpu_info().vmem_capacity_bytes)
    except Exception:  # no TPU info available -> conservative default
        cap = 64 * 1024 * 1024
    # v5e/v6e (128 MiB physical): ~109 MiB scoped limit, ~70 MiB block budget.
    # v7x (64 MiB per TC):        ~54 MiB scoped limit,  ~35 MiB block budget.
    vmem_limit = min(int(cap * 0.85), 112 * 1024 * 1024)
    block_budget = min(int(cap * 0.55), 72 * 1024 * 1024)
    return block_budget, vmem_limit


# ---------------------------------------------------------------------------
# Tile selection (static, shape-only).
# ---------------------------------------------------------------------------
def _choose_tiles(B, Cip, Co, Pp):
    """Pick (bB, bCo, Ppc, b_innermost) for the contraction grid.

    Preference order: keep bCo = Co (weights resident, x read exactly once),
    then the largest lane chunk Ppc, then the largest batch tile bB -- every
    candidate validated against the live-vreg and VMEM block budgets.  When
    the accumulator would overflow the vreg file we split Pp, not bCo/bB.
    """
    block_budget, _ = _budgets()

    n128 = Pp // 128
    ppc_cands = [128 * d for d in range(n128, 0, -1) if n128 % d == 0]
    co_cands = [Co] + [d for d in range((Co // 8) * 8, 7, -8)
                       if d != Co and Co % d == 0]
    b_cands = [d for d in range(B, 0, -1) if B % d == 0]

    def live_ok(bB, bCo, ppc):
        # f32 acc (re+im) + x 8-channel block (re+im) + one w plane (re+im).
        live = 4 * ppc * (2 * bB * bCo + 2 * 8 * bB + 2 * bCo)
        return live <= _LIVE_VREG_BUDGET

    def vmem_ok(bB, bCo, ppc):
        # re+im planes, double-buffered by the Pallas pipeline, f32.
        blocks = 16 * ppc * (bB * Cip + Cip * bCo + bB * bCo)
        return blocks <= block_budget

    choice = None
    for bCo in co_cands:                 # largest bCo first (fewest x re-reads)
        for ppc in ppc_cands:            # then largest lane chunk
            for bB in b_cands:           # then largest batch tile
                if live_ok(bB, bCo, ppc) and vmem_ok(bB, bCo, ppc):
                    choice = (bB, bCo, ppc)
                    break
            if choice:
                break
        if choice:
            break
    if choice is None:                   # last resort: smallest legal blocks
        choice = (1, co_cands[-1], 128)
    bB, bCo, ppc = choice

    # Keep >= 8 grid steps so v7x's two TensorCores both stay busy (v5e/v6e
    # single-core unaffected; shrinking never violates the budgets above).
    def n_steps(bB_, bCo_, ppc_):
        return 4 * (Pp // ppc_) * (Co // bCo_) * (B // bB_)

    while n_steps(bB, bCo, ppc) < 8:
        smaller_ppc = [p for p in ppc_cands if p < ppc]
        smaller_b = [d for d in b_cands if d < bB]
        smaller_co = [d for d in co_cands if d < bCo]
        if smaller_ppc:
            ppc = smaller_ppc[0]
        elif smaller_b:
            bB = smaller_b[0]
        elif smaller_co:
            bCo = smaller_co[0]
        else:
            break

    # Reuse the operand whose re-reads would be more expensive:
    #   b innermost -> weights resident, x re-read (nCo-1) times;
    #   o innermost -> x resident, weights re-read (nB-1) times.
    nB, nCo = B // bB, Co // bCo
    b_inner = (nCo - 1) * B <= (nB - 1) * Co
    return bB, bCo, ppc, b_inner


# ---------------------------------------------------------------------------
# Pallas kernel: one grid step = (corner, Pp chunk, {Co tile, B tile}).
# ---------------------------------------------------------------------------
def _spectral_mul_kernel(xr_ref, xi_ref, wr_ref, wi_ref, or_ref, oi_ref):
    """
    xr_ref, xi_ref : (1, bB, Cip, Ppc)  real/imag x_ft tile (channels on sublanes)
    wr_ref, wi_ref : (1, Cip, bCo, Ppc) real/imag weight tile (Co on sublanes)
    or_ref, oi_ref : (1, bB, bCo, Ppc)  real/imag contracted output tile
    """
    cip = xr_ref.shape[2]
    bB, bCo, ppc = or_ref.shape[1], or_ref.shape[2], or_ref.shape[3]
    n_blk = cip // 8  # Cip is padded to a multiple of 8

    def cblock(base, acc_r, acc_i):
        # Dense 8-sublane loads of the x channels (full vld bandwidth).
        xr8 = xr_ref[0, :, pl.ds(base, 8), :]        # (bB, 8, Ppc)
        xi8 = xi_ref[0, :, pl.ds(base, 8), :]
        for c in range(8):
            # Each weight channel is already a dense (bCo, Ppc) plane.
            wr_c = wr_ref[0, pl.ds(base + c, 1), :, :]   # (1, bCo, Ppc)
            wi_c = wi_ref[0, pl.ds(base + c, 1), :, :]
            xr_c = xr8[:, c:c + 1, :]                    # (bB, 1, Ppc) vreg subslice
            xi_c = xi8[:, c:c + 1, :]
            acc_r = acc_r + (xr_c * wr_c - xi_c * wi_c)
            acc_i = acc_i + (xr_c * wi_c + xi_c * wr_c)
        return acc_r, acc_i

    acc_r = jnp.zeros((bB, bCo, ppc), jnp.float32)
    acc_i = jnp.zeros((bB, bCo, ppc), jnp.float32)

    if n_blk <= 2:
        # Small channel count: fully unrolled.
        for j in range(n_blk):
            acc_r, acc_i = cblock(j * 8, acc_r, acc_i)
    else:
        # Effective unroll-by-8 (8 channels per iteration) with bounded live
        # ranges; small outer unroll keeps scheduler visibility.
        def body(j, accs):
            return cblock(pl.multiple_of(j * 8, 8), *accs)
        acc_r, acc_i = jax.lax.fori_loop(0, n_blk, body, (acc_r, acc_i),
                                         unroll=2)

    or_ref[0] = acc_r
    oi_ref[0] = acc_i


def _complex_mode_contract(xr, xi, wr, wi, bB, bCo, ppc, b_inner, vmem_limit):
    """Pallas call: grid over (4 corners, Pp chunks, Co tiles, B tiles)."""
    n_corner, B, Cip, Pp = xr.shape
    Co = wr.shape[2]
    assert n_corner == 4
    nB, nCo, nP = B // bB, Co // bCo, Pp // ppc

    x_blk = (1, bB, Cip, ppc)
    w_blk = (1, Cip, bCo, ppc)
    o_blk = (1, bB, bCo, ppc)

    if b_inner:   # weights resident across the B sweep
        grid = (4, nP, nCo, nB)
        x_map = lambda c, p, o, b: (c, b, 0, p)
        w_map = lambda c, p, o, b: (c, 0, o, p)
        o_map = lambda c, p, o, b: (c, b, o, p)
    else:         # x block resident across the Co sweep
        grid = (4, nP, nB, nCo)
        x_map = lambda c, p, b, o: (c, b, 0, p)
        w_map = lambda c, p, b, o: (c, 0, o, p)
        o_map = lambda c, p, b, o: (c, b, o, p)

    out_sds = jax.ShapeDtypeStruct((4, B, Co, Pp), jnp.float32)
    return pl.pallas_call(
        _spectral_mul_kernel,
        out_shape=(out_sds, out_sds),
        grid=grid,
        in_specs=[pl.BlockSpec(x_blk, x_map), pl.BlockSpec(x_blk, x_map),
                  pl.BlockSpec(w_blk, w_map), pl.BlockSpec(w_blk, w_map)],
        out_specs=(pl.BlockSpec(o_blk, o_map), pl.BlockSpec(o_blk, o_map)),
        compiler_params=pltpu.CompilerParams(
            dimension_semantics=("parallel",) * 4,
            vmem_limit_bytes=vmem_limit),
    )(xr, xi, wr, wi)


# ---------------------------------------------------------------------------
# Weight preprocessing: done ONCE per layer, outside the per-call forward.
# ---------------------------------------------------------------------------
def prepare_weights(w1, w2, w3, w4):
    """Stack the 4 corner weights, split re/im, flatten modes, pad channels to
    a multiple of 8 and modes to a multiple of 128.  Returns (wr, wi) with
    shape (4, Cip, Co, Pp) float32."""
    Ci, Co, m1, m2, m3 = w1.shape
    P = m1 * m2 * m3
    Pp = _round_up(P, 128)
    Cip = _round_up(Ci, 8)
    w = jnp.stack([w1, w2, w3, w4], axis=0).reshape(4, Ci, Co, P)
    pad = ((0, 0), (0, Cip - Ci), (0, 0), (0, Pp - P))

    def prep(a):
        return jnp.pad(a.astype(jnp.float32), pad)

    return prep(jnp.real(w)), prep(jnp.imag(w))


# ---------------------------------------------------------------------------
# Full forward pass (matches PyTorch SpectralConv3d.forward).
# ---------------------------------------------------------------------------
@functools.partial(jax.jit, static_argnames=("modes1", "modes2", "modes3"))
def spectral_conv3d(x, wr, wi, *, modes1, modes2, modes3):
    """
    x      : (B, Cin, S1, S2, S3) float32
    wr, wi : (4, Cip, Cout, Pp) float32 from prepare_weights()
    returns (B, Cout, S1, S2, S3) float32
    """
    B, Ci, S1, S2, S3 = x.shape
    m1, m2, m3 = modes1, modes2, modes3
    P = m1 * m2 * m3
    Pp = _round_up(P, 128)
    Cip = _round_up(Ci, 8)
    W3 = S3 // 2 + 1
    assert wr.shape[0] == 4 and wr.shape[1] == Cip and wr.shape[3] == Pp, wr.shape
    Co = wr.shape[2]

    # FFT glue.
    # TODO(synk): rfftn/irfftn have no Pallas TPU primitive; kept as XLA ops.
    x_ft = jnp.fft.rfftn(x, axes=(-3, -2, -1))       # (B, Ci, S1, S2, W3) c64

    # Corner gather + re/im split + pad (minimal staging; XLA fuses the
    # elementwise real/imag + pad with the gather).
    # TODO(synk): reading corners directly from x_ft inside the kernel (complex
    # ->2xf32 bitcast + offset index_map) would remove this staging copy.
    c1 = x_ft[:, :, :m1, :m2, :m3]
    c2 = x_ft[:, :, -m1:, :m2, :m3]
    c3 = x_ft[:, :, :m1, -m2:, :m3]
    c4 = x_ft[:, :, -m1:, -m2:, :m3]
    xin = jnp.stack([c1, c2, c3, c4], axis=0).reshape(4, B, Ci, P)
    pad = ((0, 0), (0, 0), (0, Cip - Ci), (0, Pp - P))
    xr = jnp.pad(jnp.real(xin).astype(jnp.float32), pad)
    xi = jnp.pad(jnp.imag(xin).astype(jnp.float32), pad)

    # Hot path: complex channel contraction per frequency mode (Pallas).
    bB, bCo, ppc, b_inner = _choose_tiles(B, Cip, Co, Pp)
    _, vmem_limit = _budgets()
    out_r, out_i = _complex_mode_contract(xr, xi, wr, wi,
                                          bB, bCo, ppc, b_inner, vmem_limit)

    out_c = (out_r[..., :P] + 1j * out_i[..., :P]).astype(jnp.complex64)
    out_c = out_c.reshape(4, B, Co, m1, m2, m3)

    # Scatter corners into the (otherwise zero) full spectrum.
    if 2 * m1 <= S1 and 2 * m2 <= S2 and m3 <= W3:
        def padz(c):  # pad the truncated z (rfft) axis with zeros
            return jnp.pad(c, ((0, 0),) * 4 + ((0, W3 - m3),))
        gap_y = jnp.zeros((B, Co, m1, S2 - 2 * m2, W3), jnp.complex64)
        x_lo = jnp.concatenate([padz(out_c[0]), gap_y, padz(out_c[2])], axis=3)
        x_hi = jnp.concatenate([padz(out_c[1]), gap_y, padz(out_c[3])], axis=3)
        gap_x = jnp.zeros((B, Co, S1 - 2 * m1, S2, W3), jnp.complex64)
        out_ft = jnp.concatenate([x_lo, gap_x, x_hi], axis=2)
    else:
        # Overlapping corners: reproduce the original (later-write-wins) order.
        out_ft = jnp.zeros((B, Co, S1, S2, W3), jnp.complex64)
        out_ft = out_ft.at[:, :, :m1, :m2, :m3].set(out_c[0])
        out_ft = out_ft.at[:, :, -m1:, :m2, :m3].set(out_c[1])
        out_ft = out_ft.at[:, :, :m1, -m2:, :m3].set(out_c[2])
        out_ft = out_ft.at[:, :, -m1:, -m2:, :m3].set(out_c[3])

    # Inverse real FFT back to the spatial domain.
    return jnp.fft.irfftn(out_ft, s=(S1, S2, S3), axes=(-3, -2, -1))


def init_weights(key, in_channels, out_channels, m1, m2, m3):
    """Mirror torch.rand(..., dtype=cfloat) * scale: real and imaginary parts
    each uniform in [0, 1), scaled by 1/(Ci*Co)."""
    scale = 1.0 / (in_channels * out_channels)
    shape = (in_channels, out_channels, m1, m2, m3)
    keys = jax.random.split(key, 8)
    ws = []
    for j in range(4):
        re = jax.random.uniform(keys[2 * j], shape, dtype=jnp.float32)
        im = jax.random.uniform(keys[2 * j + 1], shape, dtype=jnp.float32)
        ws.append((scale * (re + 1j * im)).astype(jnp.complex64))
    return ws


if __name__ == "__main__":
    # Small test configuration.
    B, Cin, Cout = 2, 4, 4
    S1 = S2 = S3 = 16
    m1, m2, m3 = 4, 4, 3

    key = jax.random.PRNGKey(0)
    kx, kw = jax.random.split(key)
    x = jax.random.normal(kx, (B, Cin, S1, S2, S3), dtype=jnp.float32)
    w1, w2, w3, w4 = init_weights(kw, Cin, Cout, m1, m2, m3)

    # Weight staging done once per layer (static across calls).
    wr, wi = prepare_weights(w1, w2, w3, w4)
    wr, wi = jax.block_until_ready((wr, wi))

    y = spectral_conv3d(x, wr, wi, modes1=m1, modes2=m2, modes3=m3)
    y = jax.block_until_ready(y)
    assert y.shape == (B, Cout, S1, S2, S3), y.shape

    # Pure-JAX reference (einsum instead of the Pallas kernel).
    def ref_forward(x, w1, w2, w3, w4):
        x_ft = jnp.fft.rfftn(x, axes=(-3, -2, -1))
        W3 = S3 // 2 + 1
        out_ft = jnp.zeros((B, Cout, S1, S2, W3), jnp.complex64)
        cm = lambda a, w: jnp.einsum("bixyz,ioxyz->boxyz", a, w)
        out_ft = out_ft.at[:, :, :m1, :m2, :m3].set(
            cm(x_ft[:, :, :m1, :m2, :m3], w1))
        out_ft = out_ft.at[:, :, -m1:, :m2, :m3].set(
            cm(x_ft[:, :, -m1:, :m2, :m3], w2))
        out_ft = out_ft.at[:, :, :m1, -m2:, :m3].set(
            cm(x_ft[:, :, :m1, -m2:, :m3], w3))
        out_ft = out_ft.at[:, :, -m1:, -m2:, :m3].set(
            cm(x_ft[:, :, -m1:, -m2:, :m3], w4))
        return jnp.fft.irfftn(out_ft, s=(S1, S2, S3), axes=(-3, -2, -1))

    y_ref = jax.block_until_ready(ref_forward(x, w1, w2, w3, w4))
    if not jnp.allclose(y, y_ref, atol=1e-5, rtol=1e-5):
        raise AssertionError("Pallas spectral conv mismatch vs reference")

    print("KERNEL_OK")
</pallas_src>

<mosaic_0001>
module attributes {stable_mosaic.version = 11 : i64} {
  func.func @_spectral_mul_kernel(%arg0: i32, %arg1: i32, %arg2: i32, %arg3: i32, %arg4: memref<1x1x8x128xf32, #tpu.memory_space<vmem>>, %arg5: memref<1x1x8x128xf32, #tpu.memory_space<vmem>>, %arg6: memref<1x8x4x128xf32, #tpu.memory_space<vmem>>, %arg7: memref<1x8x4x128xf32, #tpu.memory_space<vmem>>, %arg8: memref<1x1x4x128xf32, #tpu.memory_space<vmem>>, %arg9: memref<1x1x4x128xf32, #tpu.memory_space<vmem>>) attributes {dimension_semantics = [#tpu.dimension_semantics<parallel>, #tpu.dimension_semantics<parallel>, #tpu.dimension_semantics<parallel>, #tpu.dimension_semantics<parallel>], iteration_bounds = array<i64: 4, 1, 1, 2>, scalar_prefetch = 0 : i64, scratch_operands = 0 : i64, tpu.core_type = #tpu.core_type<tc>, window_params = [{transform_indices = @transform_0, window_bounds = array<i64: 1, 1, 8, 128>}, {transform_indices = @transform_1, window_bounds = array<i64: 1, 1, 8, 128>}, {transform_indices = @transform_2, window_bounds = array<i64: 1, 8, 4, 128>}, {transform_indices = @transform_3, window_bounds = array<i64: 1, 8, 4, 128>}, {transform_indices = @transform_4, window_bounds = array<i64: 1, 1, 4, 128>}, {transform_indices = @transform_5, window_bounds = array<i64: 1, 1, 4, 128>}]} {
    %cst = arith.constant 0.000000e+00 : f32
    %0 = vector.broadcast %cst : f32 to vector<1x4x128xf32>
    %cst_0 = arith.constant 0.000000e+00 : f32
    %1 = vector.broadcast %cst_0 : f32 to vector<1x4x128xf32>
    %c0 = arith.constant 0 : index
    %c0_1 = arith.constant 0 : index
    %c0_2 = arith.constant 0 : index
    %c0_3 = arith.constant 0 : index
    %2 = vector.load %arg4[%c0, %c0_1, %c0_2, %c0_3] : memref<1x1x8x128xf32, #tpu.memory_space<vmem>>, vector<1x1x8x128xf32>
    %3 = vector.shape_cast %2 : vector<1x1x8x128xf32> to vector<1x8x128xf32>
    %c0_4 = arith.constant 0 : index
    %c0_5 = arith.constant 0 : index
    %c0_6 = arith.constant 0 : index
    %c0_7 = arith.constant 0 : index
    %4 = vector.load %arg5[%c0_4, %c0_5, %c0_6, %c0_7] : memref<1x1x8x128xf32, #tpu.memory_space<vmem>>, vector<1x1x8x128xf32>
    %5 = vector.shape_cast %4 : vector<1x1x8x128xf32> to vector<1x8x128xf32>
    %c0_8 = arith.constant 0 : index
    %c0_9 = arith.constant 0 : index
    %c0_10 = arith.constant 0 : index
    %c0_11 = arith.constant 0 : index
    %6 = vector.load %arg6[%c0_8, %c0_9, %c0_10, %c0_11] : memref<1x8x4x128xf32, #tpu.memory_space<vmem>>, vector<1x1x4x128xf32>
    %7 = vector.shape_cast %6 : vector<1x1x4x128xf32> to vector<1x4x128xf32>
    %c0_12 = arith.constant 0 : index
    %c0_13 = arith.constant 0 : index
    %c0_14 = arith.constant 0 : index
    %c0_15 = arith.constant 0 : index
    %8 = vector.load %arg7[%c0_12, %c0_13, %c0_14, %c0_15] : memref<1x8x4x128xf32, #tpu.memory_space<vmem>>, vector<1x1x4x128xf32>
    %9 = vector.shape_cast %8 : vector<1x1x4x128xf32> to vector<1x4x128xf32>
    %10 = vector.extract_strided_slice %3 {offsets = [0, 0, 0], sizes = [1, 1, 128], strides = [1, 1, 1]} : vector<1x8x128xf32> to vector<1x1x128xf32>
    %11 = vector.extract_strided_slice %5 {offsets = [0, 0, 0], sizes = [1, 1, 128], strides = [1, 1, 1]} : vector<1x8x128xf32> to vector<1x1x128xf32>
    %12 = vector.broadcast %10 : vector<1x1x128xf32> to vector<1x4x128xf32>
    %13 = arith.mulf %12, %7 : vector<1x4x128xf32>
    %14 = vector.broadcast %11 : vector<1x1x128xf32> to vector<1x4x128xf32>
    %15 = arith.mulf %14, %9 : vector<1x4x128xf32>
    %16 = arith.subf %13, %15 : vector<1x4x128xf32>
    %17 = arith.addf %0, %16 : vector<1x4x128xf32>
    %18 = vector.broadcast %10 : vector<1x1x128xf32> to vector<1x4x128xf32>
    %19 = arith.mulf %18, %9 : vector<1x4x128xf32>
    %20 = vector.broadcast %11 : vector<1x1x128xf32> to vector<1x4x128xf32>
    %21 = arith.mulf %20, %7 : vector<1x4x128xf32>
    %22 = arith.addf %19, %21 : vector<1x4x128xf32>
    %23 = arith.addf %1, %22 : vector<1x4x128xf32>
    %c0_16 = arith.constant 0 : index
    %c1 = arith.constant 1 : index
    %c0_17 = arith.constant 0 : index
    %c0_18 = arith.constant 0 : index
    %24 = vector.load %arg6[%c0_16, %c1, %c0_17, %c0_18] : memref<1x8x4x128xf32, #tpu.memory_space<vmem>>, vector<1x1x4x128xf32>
    %25 = vector.shape_cast %24 : vector<1x1x4x128xf32> to vector<1x4x128xf32>
    %c0_19 = arith.constant 0 : index
    %c1_20 = arith.constant 1 : index
    %c0_21 = arith.constant 0 : index
    %c0_22 = arith.constant 0 : index
    %26 = vector.load %arg7[%c0_19, %c1_20, %c0_21, %c0_22] : memref<1x8x4x128xf32, #tpu.memory_space<vmem>>, vector<1x1x4x128xf32>
    %27 = vector.shape_cast %26 : vector<1x1x4x128xf32> to vector<1x4x128xf32>
    %28 = vector.extract_strided_slice %3 {offsets = [0, 1, 0], sizes = [1, 1, 128], strides = [1, 1, 1]} : vector<1x8x128xf32> to vector<1x1x128xf32>
    %29 = vector.extract_strided_slice %5 {offsets = [0, 1, 0], sizes = [1, 1, 128], strides = [1, 1, 1]} : vector<1x8x128xf32> to vector<1x1x128xf32>
    %30 = vector.broadcast %28 : vector<1x1x128xf32> to vector<1x4x128xf32>
    %31 = arith.mulf %30, %25 : vector<1x4x128xf32>
    %32 = vector.broadcast %29 : vector<1x1x128xf32> to vector<1x4x128xf32>
    %33 = arith.mulf %32, %27 : vector<1x4x128xf32>
    %34 = arith.subf %31, %33 : vector<1x4x128xf32>
    %35 = arith.addf %17, %34 : vector<1x4x128xf32>
    %36 = vector.broadcast %28 : vector<1x1x128xf32> to vector<1x4x128xf32>
    %37 = arith.mulf %36, %27 : vector<1x4x128xf32>
    %38 = vector.broadcast %29 : vector<1x1x128xf32> to vector<1x4x128xf32>
    %39 = arith.mulf %38, %25 : vector<1x4x128xf32>
    %40 = arith.addf %37, %39 : vector<1x4x128xf32>
    %41 = arith.addf %23, %40 : vector<1x4x128xf32>
    %c0_23 = arith.constant 0 : index
    %c2 = arith.constant 2 : index
    %c0_24 = arith.constant 0 : index
    %c0_25 = arith.constant 0 : index
    %42 = vector.load %arg6[%c0_23, %c2, %c0_24, %c0_25] : memref<1x8x4x128xf32, #tpu.memory_space<vmem>>, vector<1x1x4x128xf32>
    %43 = vector.shape_cast %42 : vector<1x1x4x128xf32> to vector<1x4x128xf32>
    %c0_26 = arith.constant 0 : index
    %c2_27 = arith.constant 2 : index
    %c0_28 = arith.constant 0 : index
    %c0_29 = arith.constant 0 : index
    %44 = vector.load %arg7[%c0_26, %c2_27, %c0_28, %c0_29] : memref<1x8x4x128xf32, #tpu.memory_space<vmem>>, vector<1x1x4x128xf32>
    %45 = vector.shape_cast %44 : vector<1x1x4x128xf32> to vector<1x4x128xf32>
    %46 = vector.extract_strided_slice %3 {offsets = [0, 2, 0], sizes = [1, 1, 128], strides = [1, 1, 1]} : vector<1x8x128xf32> to vector<1x1x128xf32>
    %47 = vector.extract_strided_slice %5 {offsets = [0, 2, 0], sizes = [1, 1, 128], strides = [1, 1, 1]} : vector<1x8x128xf32> to vector<1x1x128xf32>
    %48 = vector.broadcast %46 : vector<1x1x128xf32> to vector<1x4x128xf32>
    %49 = arith.mulf %48, %43 : vector<1x4x128xf32>
    %50 = vector.broadcast %47 : vector<1x1x128xf32> to vector<1x4x128xf32>
    %51 = arith.mulf %50, %45 : vector<1x4x128xf32>
    %52 = arith.subf %49, %51 : vector<1x4x128xf32>
    %53 = arith.addf %35, %52 : vector<1x4x128xf32>
    %54 = vector.broadcast %46 : vector<1x1x128xf32> to vector<1x4x128xf32>
    %55 = arith.mulf %54, %45 : vector<1x4x128xf32>
    %56 = vector.broadcast %47 : vector<1x1x128xf32> to vector<1x4x128xf32>
    %57 = arith.mulf %56, %43 : vector<1x4x128xf32>
    %58 = arith.addf %55, %57 : vector<1x4x128xf32>
    %59 = arith.addf %41, %58 : vector<1x4x128xf32>
    %c0_30 = arith.constant 0 : index
    %c3 = arith.constant 3 : index
    %c0_31 = arith.constant 0 : index
    %c0_32 = arith.constant 0 : index
    %60 = vector.load %arg6[%c0_30, %c3, %c0_31, %c0_32] : memref<1x8x4x128xf32, #tpu.memory_space<vmem>>, vector<1x1x4x128xf32>
    %61 = vector.shape_cast %60 : vector<1x1x4x128xf32> to vector<1x4x128xf32>
    %c0_33 = arith.constant 0 : index
    %c3_34 = arith.constant 3 : index
    %c0_35 = arith.constant 0 : index
    %c0_36 = arith.constant 0 : index
    %62 = vector.load %arg7[%c0_33, %c3_34, %c0_35, %c0_36] : memref<1x8x4x128xf32, #tpu.memory_space<vmem>>, vector<1x1x4x128xf32>
    %63 = vector.shape_cast %62 : vector<1x1x4x128xf32> to vector<1x4x128xf32>
    %64 = vector.extract_strided_slice %3 {offsets = [0, 3, 0], sizes = [1, 1, 128], strides = [1, 1, 1]} : vector<1x8x128xf32> to vector<1x1x128xf32>
    %65 = vector.extract_strided_slice %5 {offsets = [0, 3, 0], sizes = [1, 1, 128], strides = [1, 1, 1]} : vector<1x8x128xf32> to vector<1x1x128xf32>
    %66 = vector.broadcast %64 : vector<1x1x128xf32> to vector<1x4x128xf32>
    %67 = arith.mulf %66, %61 : vector<1x4x128xf32>
    %68 = vector.broadcast %65 : vector<1x1x128xf32> to vector<1x4x128xf32>
    %69 = arith.mulf %68, %63 : vector<1x4x128xf32>
    %70 = arith.subf %67, %69 : vector<1x4x128xf32>
    %71 = arith.addf %53, %70 : vector<1x4x128xf32>
    %72 = vector.broadcast %64 : vector<1x1x128xf32> to vector<1x4x128xf32>
    %73 = arith.mulf %72, %63 : vector<1x4x128xf32>
    %74 = vector.broadcast %65 : vector<1x1x128xf32> to vector<1x4x128xf32>
    %75 = arith.mulf %74, %61 : vector<1x4x128xf32>
    %76 = arith.addf %73, %75 : vector<1x4x128xf32>
    %77 = arith.addf %59, %76 : vector<1x4x128xf32>
    %c0_37 = arith.constant 0 : index
    %c4 = arith.constant 4 : index
    %c0_38 = arith.constant 0 : index
    %c0_39 = arith.constant 0 : index
    %78 = vector.load %arg6[%c0_37, %c4, %c0_38, %c0_39] : memref<1x8x4x128xf32, #tpu.memory_space<vmem>>, vector<1x1x4x128xf32>
    %79 = vector.shape_cast %78 : vector<1x1x4x128xf32> to vector<1x4x128xf32>
    %c0_40 = arith.constant 0 : index
    %c4_41 = arith.constant 4 : index
    %c0_42 = arith.constant 0 : index
    %c0_43 = arith.constant 0 : index
    %80 = vector.load %arg7[%c0_40, %c4_41, %c0_42, %c0_43] : memref<1x8x4x128xf32, #tpu.memory_space<vmem>>, vector<1x1x4x128xf32>
    %81 = vector.shape_cast %80 : vector<1x1x4x128xf32> to vector<1x4x128xf32>
    %82 = vector.extract_strided_slice %3 {offsets = [0, 4, 0], sizes = [1, 1, 128], strides = [1, 1, 1]} : vector<1x8x128xf32> to vector<1x1x128xf32>
    %83 = vector.extract_strided_slice %5 {offsets = [0, 4, 0], sizes = [1, 1, 128], strides = [1, 1, 1]} : vector<1x8x128xf32> to vector<1x1x128xf32>
    %84 = vector.broadcast %82 : vector<1x1x128xf32> to vector<1x4x128xf32>
    %85 = arith.mulf %84, %79 : vector<1x4x128xf32>
    %86 = vector.broadcast %83 : vector<1x1x128xf32> to vector<1x4x128xf32>
    %87 = arith.mulf %86, %81 : vector<1x4x128xf32>
    %88 = arith.subf %85, %87 : vector<1x4x128xf32>
    %89 = arith.addf %71, %88 : vector<1x4x128xf32>
    %90 = vector.broadcast %82 : vector<1x1x128xf32> to vector<1x4x128xf32>
    %91 = arith.mulf %90, %81 : vector<1x4x128xf32>
    %92 = vector.broadcast %83 : vector<1x1x128xf32> to vector<1x4x128xf32>
    %93 = arith.mulf %92, %79 : vector<1x4x128xf32>
    %94 = arith.addf %91, %93 : vector<1x4x128xf32>
    %95 = arith.addf %77, %94 : vector<1x4x128xf32>
    %c0_44 = arith.constant 0 : index
    %c5 = arith.constant 5 : index
    %c0_45 = arith.constant 0 : index
    %c0_46 = arith.constant 0 : index
    %96 = vector.load %arg6[%c0_44, %c5, %c0_45, %c0_46] : memref<1x8x4x128xf32, #tpu.memory_space<vmem>>, vector<1x1x4x128xf32>
    %97 = vector.shape_cast %96 : vector<1x1x4x128xf32> to vector<1x4x128xf32>
    %c0_47 = arith.constant 0 : index
    %c5_48 = arith.constant 5 : index
    %c0_49 = arith.constant 0 : index
    %c0_50 = arith.constant 0 : index
    %98 = vector.load %arg7[%c0_47, %c5_48, %c0_49, %c0_50] : memref<1x8x4x128xf32, #tpu.memory_space<vmem>>, vector<1x1x4x128xf32>
    %99 = vector.shape_cast %98 : vector<1x1x4x128xf32> to vector<1x4x128xf32>
    %100 = vector.extract_strided_slice %3 {offsets = [0, 5, 0], sizes = [1, 1, 128], strides = [1, 1, 1]} : vector<1x8x128xf32> to vector<1x1x128xf32>
    %101 = vector.extract_strided_slice %5 {offsets = [0, 5, 0], sizes = [1, 1, 128], strides = [1, 1, 1]} : vector<1x8x128xf32> to vector<1x1x128xf32>
    %102 = vector.broadcast %100 : vector<1x1x128xf32> to vector<1x4x128xf32>
    %103 = arith.mulf %102, %97 : vector<1x4x128xf32>
    %104 = vector.broadcast %101 : vector<1x1x128xf32> to vector<1x4x128xf32>
    %105 = arith.mulf %104, %99 : vector<1x4x128xf32>
    %106 = arith.subf %103, %105 : vector<1x4x128xf32>
    %107 = arith.addf %89, %106 : vector<1x4x128xf32>
    %108 = vector.broadcast %100 : vector<1x1x128xf32> to vector<1x4x128xf32>
    %109 = arith.mulf %108, %99 : vector<1x4x128xf32>
    %110 = vector.broadcast %101 : vector<1x1x128xf32> to vector<1x4x128xf32>
    %111 = arith.mulf %110, %97 : vector<1x4x128xf32>
    %112 = arith.addf %109, %111 : vector<1x4x128xf32>
    %113 = arith.addf %95, %112 : vector<1x4x128xf32>
    %c0_51 = arith.constant 0 : index
    %c6 = arith.constant 6 : index
    %c0_52 = arith.constant 0 : index
    %c0_53 = arith.constant 0 : index
    %114 = vector.load %arg6[%c0_51, %c6, %c0_52, %c0_53] : memref<1x8x4x128xf32, #tpu.memory_space<vmem>>, vector<1x1x4x128xf32>
    %115 = vector.shape_cast %114 : vector<1x1x4x128xf32> to vector<1x4x128xf32>
    %c0_54 = arith.constant 0 : index
    %c6_55 = arith.constant 6 : index
    %c0_56 = arith.constant 0 : index
    %c0_57 = arith.constant 0 : index
    %116 = vector.load %arg7[%c0_54, %c6_55, %c0_56, %c0_57] : memref<1x8x4x128xf32, #tpu.memory_space<vmem>>, vector<1x1x4x128xf32>
    %117 = vector.shape_cast %116 : vector<1x1x4x128xf32> to vector<1x4x128xf32>
    %118 = vector.extract_strided_slice %3 {offsets = [0, 6, 0], sizes = [1, 1, 128], strides = [1, 1, 1]} : vector<1x8x128xf32> to vector<1x1x128xf32>
    %119 = vector.extract_strided_slice %5 {offsets = [0, 6, 0], sizes = [1, 1, 128], strides = [1, 1, 1]} : vector<1x8x128xf32> to vector<1x1x128xf32>
    %120 = vector.broadcast %118 : vector<1x1x128xf32> to vector<1x4x128xf32>
    %121 = arith.mulf %120, %115 : vector<1x4x128xf32>
    %122 = vector.broadcast %119 : vector<1x1x128xf32> to vector<1x4x128xf32>
    %123 = arith.mulf %122, %117 : vector<1x4x128xf32>
    %124 = arith.subf %121, %123 : vector<1x4x128xf32>
    %125 = arith.addf %107, %124 : vector<1x4x128xf32>
    %126 = vector.broadcast %118 : vector<1x1x128xf32> to vector<1x4x128xf32>
    %127 = arith.mulf %126, %117 : vector<1x4x128xf32>
    %128 = vector.broadcast %119 : vector<1x1x128xf32> to vector<1x4x128xf32>
    %129 = arith.mulf %128, %115 : vector<1x4x128xf32>
    %130 = arith.addf %127, %129 : vector<1x4x128xf32>
    %131 = arith.addf %113, %130 : vector<1x4x128xf32>
    %c0_58 = arith.constant 0 : index
    %c7 = arith.constant 7 : index
    %c0_59 = arith.constant 0 : index
    %c0_60 = arith.constant 0 : index
    %132 = vector.load %arg6[%c0_58, %c7, %c0_59, %c0_60] : memref<1x8x4x128xf32, #tpu.memory_space<vmem>>, vector<1x1x4x128xf32>
    %133 = vector.shape_cast %132 : vector<1x1x4x128xf32> to vector<1x4x128xf32>
    %c0_61 = arith.constant 0 : index
    %c7_62 = arith.constant 7 : index
    %c0_63 = arith.constant 0 : index
    %c0_64 = arith.constant 0 : index
    %134 = vector.load %arg7[%c0_61, %c7_62, %c0_63, %c0_64] : memref<1x8x4x128xf32, #tpu.memory_space<vmem>>, vector<1x1x4x128xf32>
    %135 = vector.shape_cast %134 : vector<1x1x4x128xf32> to vector<1x4x128xf32>
    %136 = vector.extract_strided_slice %3 {offsets = [0, 7, 0], sizes = [1, 1, 128], strides = [1, 1, 1]} : vector<1x8x128xf32> to vector<1x1x128xf32>
    %137 = vector.extract_strided_slice %5 {offsets = [0, 7, 0], sizes = [1, 1, 128], strides = [1, 1, 1]} : vector<1x8x128xf32> to vector<1x1x128xf32>
    %138 = vector.broadcast %136 : vector<1x1x128xf32> to vector<1x4x128xf32>
    %139 = arith.mulf %138, %133 : vector<1x4x128xf32>
    %140 = vector.broadcast %137 : vector<1x1x128xf32> to vector<1x4x128xf32>
    %141 = arith.mulf %140, %135 : vector<1x4x128xf32>
    %142 = arith.subf %139, %141 : vector<1x4x128xf32>
    %143 = arith.addf %125, %142 : vector<1x4x128xf32>
    %144 = vector.broadcast %136 : vector<1x1x128xf32> to vector<1x4x128xf32>
    %145 = arith.mulf %144, %135 : vector<1x4x128xf32>
    %146 = vector.broadcast %137 : vector<1x1x128xf32> to vector<1x4x128xf32>
    %147 = arith.mulf %146, %133 : vector<1x4x128xf32>
    %148 = arith.addf %145, %147 : vector<1x4x128xf32>
    %149 = arith.addf %131, %148 : vector<1x4x128xf32>
    %c0_65 = arith.constant 0 : index
    %c0_66 = arith.constant 0 : index
    %c0_67 = arith.constant 0 : index
    %c0_68 = arith.constant 0 : index
    %150 = vector.load %arg8[%c0_65, %c0_66, %c0_67, %c0_68] : memref<1x1x4x128xf32, #tpu.memory_space<vmem>>, vector<1x1x4x128xf32>
    %151 = vector.shape_cast %150 : vector<1x1x4x128xf32> to vector<1x4x128xf32>
    %152 = vector.shape_cast %143 : vector<1x4x128xf32> to vector<1x1x4x128xf32>
    tpu.vector_store %arg8[%c0_65, %c0_66, %c0_67, %c0_68], %152 {strides = array<i32>} : memref<1x1x4x128xf32, #tpu.memory_space<vmem>>, vector<1x1x4x128xf32>,
    %c0_69 = arith.constant 0 : index
    %c0_70 = arith.constant 0 : index
    %c0_71 = arith.constant 0 : index
    %c0_72 = arith.constant 0 : index
    %153 = vector.load %arg9[%c0_69, %c0_70, %c0_71, %c0_72] : memref<1x1x4x128xf32, #tpu.memory_space<vmem>>, vector<1x1x4x128xf32>
    %154 = vector.shape_cast %153 : vector<1x1x4x128xf32> to vector<1x4x128xf32>
    %155 = vector.shape_cast %149 : vector<1x4x128xf32> to vector<1x1x4x128xf32>
    tpu.vector_store %arg9[%c0_69, %c0_70, %c0_71, %c0_72], %155 {strides = array<i32>} : memref<1x1x4x128xf32, #tpu.memory_space<vmem>>, vector<1x1x4x128xf32>,
    return
  }
  func.func @transform_0(%arg0: i32, %arg1: i32, %arg2: i32, %arg3: i32) -> (i32, i32, i32, i32) {
    %c0_i32 = arith.constant 0 : i32
    %c0_i32_0 = arith.constant 0 : i32
    return %arg0, %arg3, %c0_i32, %arg1 : i32, i32, i32, i32
  }
  func.func @transform_1(%arg0: i32, %arg1: i32, %arg2: i32, %arg3: i32) -> (i32, i32, i32, i32) {
    %c0_i32 = arith.constant 0 : i32
    %c0_i32_0 = arith.constant 0 : i32
    return %arg0, %arg3, %c0_i32, %arg1 : i32, i32, i32, i32
  }
  func.func @transform_2(%arg0: i32, %arg1: i32, %arg2: i32, %arg3: i32) -> (i32, i32, i32, i32) {
    %c0_i32 = arith.constant 0 : i32
    %c0_i32_0 = arith.constant 0 : i32
    return %arg0, %c0_i32, %arg2, %arg1 : i32, i32, i32, i32
  }
  func.func @transform_3(%arg0: i32, %arg1: i32, %arg2: i32, %arg3: i32) -> (i32, i32, i32, i32) {
    %c0_i32 = arith.constant 0 : i32
    %c0_i32_0 = arith.constant 0 : i32
    return %arg0, %c0_i32, %arg2, %arg1 : i32, i32, i32, i32
  }
  func.func @transform_4(%arg0: i32, %arg1: i32, %arg2: i32, %arg3: i32) -> (i32, i32, i32, i32) {
    %c0_i32 = arith.constant 0 : i32
    return %arg0, %arg3, %arg2, %arg1 : i32, i32, i32, i32
  }
  func.func @transform_5(%arg0: i32, %arg1: i32, %arg2: i32, %arg3: i32) -> (i32, i32, i32, i32) {
    %c0_i32 = arith.constant 0 : i32
    return %arg0, %arg3, %arg2, %arg1 : i32, i32, i32, i32
  }
}

</mosaic_0001>

<bundles_post_ra>
// kernel: spectral_conv3d.1
= control target key start
LH: loop header
LB: loop body
LE: loop exit
PB: predicated region body
PF: predicated region fallthrough
CT: control target
= control target key end

     0   :  { %s1012_s18 = smov 0   ;;  %s1014_s19 = smov 0   ;;  %s1113_s0 = inlined_call_operand.vmem [shape: f32[4,2,8,128], index: 0, kind: input, shape index: {}]   ;;  %s1114_s1 = inlined_call_operand.vmem [shape: f32[4,2,8,128], index: 1, kind: input, shape index: {}]   ;;  %s1115_s2 = inlined_call_operand.vmem [shape: f32[4,8,4,128], index: 2, kind: input, shape index: {}]   ;;  %s1116_s3 = inlined_call_operand.vmem [shape: f32[4,8,4,128], index: 3, kind: input, shape index: {}]   ;;  %s1117_s4 = inlined_call_operand.vmem [shape: f32[4,2,4,128], index: 4, kind: output, shape index: {0}]   ;;  %s1118_s5 = inlined_call_operand.vmem [shape: f32[4,2,4,128], index: 5, kind: output, shape index: {1}]  }
   0x1   :  { %s1016_s20 = smov 0   ;;  %s1018_s21 = smov 0  }
   0x2   :  { %s1020_s22 = smov 0  }
   0x3 LB: > { %s31_s23 = sadd.s32 1, %s972_s20  ;;  %s42_s24 = sadd.s32 1, %s976_s21  ;;  %s980_s22 = sphi %s1020_s22, %s16_s22   ;;  %s976_s21 = sphi %s1018_s21, %s1122_s21   ;;  %s972_s20 = sphi %s1016_s20, %s1121_s20   ;;  %s968_s19 = sphi %s1014_s19, %s1120_s19   ;;  %s964_s18 = sphi %s1012_s18, %s1119_s18  }
   0x4   : > { %p32_p0 = scmp.ge.s32.totalorder %s31_s23, 2  ;;  %p871_p1 = scmp.ge.s32.totalorder %s980_s22, 1 }
   0x5   : > { %p298_p2 = scmp.lt.s32.totalorder %s980_s22, 9 }
   0x6   : > { %s1124_s23 = smov (%p32_p0, %s31_s23), 0  ;;  %s1126_s24 = smov (!%p32_p0, %s42_s24), %s976_s21 }
   0x7   : > { %p299_p3 = pnand %p871_p1, %p298_p2  ;;  %p44_p4 = scmp.ge.s32.totalorder %s1126_s24, 4 }
   0x8   : > { %p388_p5 = scmp.lt.s32.totalorder (!%p299_p3), %s968_s19, 3  ;;  %p390_p6 = scmp.lt.s32.totalorder (!%p299_p3), %s964_s18, 1  ;;  %v464_v0 = vlaneseq (!%p299_p3) }
   0x9   : > { %s1128_s24 = smov (%p44_p4, %s1126_s24), 0  ;;  %302 = sbr.rel (%p299_p3) target bundleno = 51 (0x33), region = 36 }
   0xa   : > { %v1042_v1 = vshrl.u32 (!%p299_p3), %v464_v0, 7 }
   0xc   : > { %v466_v2 = vsub.s32 (!%p299_p3), 0, %v1042_v1  ;;  %v486_v3 = vsub.s32 (!%p299_p3), 1, %v1042_v1  ;;  %v506_v4 = vsub.s32 (!%p299_p3), 2, %v1042_v1  ;;  %v526_v6 = vsub.s32 (!%p299_p3), 3, %v1042_v1 }
   0xd   : > { %v546_v7 = vsub.s32 (!%p299_p3), 4, %v1042_v1  ;;  %v566_v8 = vsub.s32 (!%p299_p3), 5, %v1042_v1  ;;  %v586_v15 = vsub.s32 (!%p299_p3), 6, %v1042_v1  ;;  %v606_v16 = vsub.s32 (!%p299_p3), 7, %v1042_v1 }
  0x10   : > { %s1130_s19 = smov (!%p388_p5, %s968_s19), 3  ;;  %s1132_s18 = smov (!%p390_p6, %s964_s18), 1 }
  0x11   : > { %s872_s25 = sshll.u32 %s1130_s19, 1  ;;  %s900_s26 = sshll.u32 %s1130_s19, 5 }
  0x12   : > { %s1044_s27 = sadd.s32 %s872_s25, %s1132_s18  ;;  %s1049_s30 = scalar_lea.vmem %s1115_s2, %s900_s26 }
  0x13   : > { %s873_s6 = sshll.u32 %s1044_s27, 3  ;;  %s1058_s9 = scalar_lea.vmem %s1116_s3, %s900_s26  ;;  %v1061_v5 = vld [vmem:[%s1049_s30] sm:$0xf]  ;;  %v884_v10 = vld [vmem:[%s1049_s30 + $0x4] sm:$0xf] }
  0x14   : > { %s398_s12 = scalar_lea.vmem %s1113_s0, %s873_s6  ;;  %s409_s15 = scalar_lea.vmem %s1114_s1, %s873_s6  ;;  %v463_v9 = vld [vmem:[%s1058_s9] sm:$0xf]  ;;  %v885_v11 = vld [vmem:[%s1058_s9 + $0x4] sm:$0xf]  ;;  %v886_v14 = vld [vmem:[%s1049_s30 + $0x8] sm:$0xf] }
  0x15   : > { %v460_v12 = vld [vmem:[%s398_s12] sm:$0xff]  ;;  %v887_v21 = vld [vmem:[%s1058_s9 + $0x8] sm:$0xf]  ;;  %v888_v22 = vld [vmem:[%s1049_s30 + $0xc] sm:$0xf]  ;;  %s881_s16 = sshll.u32 %s1044_s27, 2 }
  0x16   : > { %v461_v13 = vld [vmem:[%s409_s15] sm:$0xff]  ;;  %v467_v17 = vrot.slane %v460_v12, %v466_v2  ;;  %v487_v19 = vrot.slane %v460_v12, %v486_v3  ;;  %v889_v23 = vld [vmem:[%s1058_s9 + $0xc] sm:$0xf]  ;;  %v507_v24 = vrot.slane %v460_v12, %v506_v4  ;;  %v527_v26 = vrot.slane %v460_v12, %v526_v6  ;;  %v890_v36 = vld [vmem:[%s1049_s30 + $0x10] sm:$0xf]  ;;  %s445_s19 = scalar_lea.vmem %s1117_s4, %s881_s16  ;;  %s459_s27 = scalar_lea.vmem %s1118_s5, %s881_s16 }
  0x17   : > { %v472_v18 = vrot.slane %v461_v13, %v466_v2  ;;  %v492_v20 = vrot.slane %v461_v13, %v486_v3  ;;  %v512_v25 = vrot.slane %v461_v13, %v506_v4  ;;  %v532_v27 = vrot.slane %v461_v13, %v526_v6  ;;  %v891_v37 = vld [vmem:[%s1058_s9 + $0x10] sm:$0xf]  ;;  %v892_v42 = vld [vmem:[%s1049_s30 + $0x14] sm:$0xf]  ;;  %v894_v48 = vld [vmem:[%s1049_s30 + $0x18] sm:$0xf] }
  0x18   : > { %v468_v28 = vmul.f32 %v467_v17, %v1061_v5  ;;  %v488_v30 = vmul.f32 %v884_v10, %v487_v19  ;;  %v508_v32 = vmul.f32 %v886_v14, %v507_v24  ;;  %v528_v34 = vmul.f32 %v888_v22, %v527_v26  ;;  %v893_v43 = vld [vmem:[%s1058_s9 + $0x14] sm:$0xf]  ;;  %v895_v52 = vld [vmem:[%s1058_s9 + $0x18] sm:$0xf]  ;;  %v896_v54 = vld [vmem:[%s1049_s30 + $0x1c] sm:$0xf] }
  0x19   : > { %v473_v29 = vmul.f32 %v472_v18, %v463_v9  ;;  %v493_v31 = vmul.f32 %v885_v11, %v492_v20  ;;  %v513_v33 = vmul.f32 %v887_v21, %v512_v25  ;;  %v533_v35 = vmul.f32 %v889_v23, %v532_v27  ;;  %v897_v58 = vld [vmem:[%s1058_s9 + $0x1c] sm:$0xf] }
  0x1a   : > { %v547_v40 = vrot.slane %v460_v12, %v546_v7  ;;  %v552_v41 = vrot.slane %v461_v13, %v546_v7  ;;  %v567_v46 = vrot.slane %v460_v12, %v566_v8  ;;  %v572_v47 = vrot.slane %v461_v13, %v566_v8 }
  0x1b   : > { %v474_v38 = vsub.f32 %v468_v28, %v473_v29  ;;  %v494_v39 = vsub.f32 %v488_v30, %v493_v31  ;;  %v514_v44 = vsub.f32 %v508_v32, %v513_v33  ;;  %v534_v45 = vsub.f32 %v528_v34, %v533_v35 }
  0x1c   : > { %v548_v50 = vmul.f32 %v890_v36, %v547_v40  ;;  %v553_v51 = vmul.f32 %v891_v37, %v552_v41  ;;  %v587_v53 = vrot.slane %v460_v12, %v586_v15  ;;  %v568_v55 = vmul.f32 %v892_v42, %v567_v46 }
  0x1d   : > { %v495_v49 = vadd.f32 %v494_v39, %v474_v38  ;;  %v573_v56 = vmul.f32 %v893_v43, %v572_v47  ;;  %v592_v57 = vrot.slane %v461_v13, %v586_v15  ;;  %v607_v59 = vrot.slane %v460_v12, %v606_v16 }
  0x1e   : > { %v554_v61 = vsub.f32 %v548_v50, %v553_v51  ;;  %v588_v62 = vmul.f32 %v894_v48, %v587_v53  ;;  %v612_v63 = vrot.slane %v461_v13, %v606_v16  ;;  %v476_v3 = vmul.f32 %v467_v17, %v463_v9 }
  0x1f   : > { %v515_v60 = vadd.f32 %v514_v44, %v495_v49  ;;  %v574_v0 = vsub.f32 %v568_v55, %v573_v56  ;;  %v593_v1 = vmul.f32 %v895_v52, %v592_v57  ;;  %v608_v2 = vmul.f32 %v896_v54, %v607_v59 }
  0x20   : > { %v613_v6 = vmul.f32 %v897_v58, %v612_v63  ;;  %v477_v7 = vmul.f32 %v472_v18, %v1061_v5  ;;  %v496_v8 = vmul.f32 %v885_v11, %v487_v19  ;;  %v497_v28 = vmul.f32 %v884_v10, %v492_v20 }
  0x21   : > { %v535_v4 = vadd.f32 %v534_v45, %v515_v60  ;;  %v516_v29 = vmul.f32 %v887_v21, %v507_v24  ;;  %v517_v30 = vmul.f32 %v886_v14, %v512_v25  ;;  %v594_v31 = vsub.f32 %v588_v62, %v593_v1 }
  0x22   : > { %v478_v12 = vadd.f32 %v477_v7, %v476_v3  ;;  %v536_v32 = vmul.f32 %v889_v23, %v527_v26  ;;  %v498_v33 = vadd.f32 %v497_v28, %v496_v8  ;;  %v537_v13 = vmul.f32 %v888_v22, %v532_v27 }
  0x23   : > { %v555_v15 = vadd.f32 %v554_v61, %v535_v4  ;;  %v518_v34 = vadd.f32 %v517_v30, %v516_v29  ;;  %v556_v16 = vmul.f32 %v891_v37, %v547_v40  ;;  %v614_v9 = vsub.f32 %v608_v2, %v613_v6 }
  0x24   : > { %v557_v17 = vmul.f32 %v890_v36, %v552_v41  ;;  %v499_v38 = vadd.f32 %v498_v33, %v478_v12  ;;  %v538_v39 = vadd.f32 %v537_v13, %v536_v32  ;;  %v576_v44 = vmul.f32 %v893_v43, %v567_v46 }
  0x25   : > { %v575_v35 = vadd.f32 %v574_v0, %v555_v15  ;;  %v577_v5 = vmul.f32 %v892_v42, %v572_v47  ;;  %v596_v18 = vmul.f32 %v895_v52, %v587_v53  ;;  %v597_v19 = vmul.f32 %v894_v48, %v592_v57 }
  0x26   : > { %v519_v10 = vadd.f32 %v518_v34, %v499_v38  ;;  %v558_v14 = vadd.f32 %v557_v17, %v556_v16  ;;  %v616_v23 = vmul.f32 %v897_v58, %v607_v59  ;;  %v617_v24 = vmul.f32 %v896_v54, %v612_v63 }
  0x27   : > { %v595_v11 = vadd.f32 %v594_v31, %v575_v35  ;;  %v578_v22 = vadd.f32 %v577_v5, %v576_v44  ;;  %v598_v26 = vadd.f32 %v597_v19, %v596_v18 }
  0x28   : > { %v539_v21 = vadd.f32 %v538_v39, %v519_v10  ;;  %v618_v36 = vadd.f32 %v617_v24, %v616_v23 }
  0x29   : > { %v615_v20 = vadd.f32 %v614_v9, %v595_v11 }
  0x2a   : > { %v559_v25 = vadd.f32 %v558_v14, %v539_v21 }
  0x2b   : > { %620 = vst [vmem:[%s445_s19] sm:$0xf] %v615_v20 }
  0x2c   : > { %v579_v27 = vadd.f32 %v578_v22, %v559_v25 }
  0x2e   : > { %v599_v37 = vadd.f32 %v598_v26, %v579_v27 }
  0x30   : > { %v619_v40 = vadd.f32 %v618_v36, %v599_v37 }
  0x32   : > { %621 = vst [vmem:[%s459_s27] sm:$0xf] %v619_v40 }
  0x33 PF: > { %s16_s22 = sadd.s32 1, %s980_s22   ;;  %s1119_s18 = smov %s972_s20 }
  0x34   : > { %p13_p7 = scmp.ge.s32.totalorder %s16_s22, 10   ;;  %s1120_s19 = smov %s976_s21 }
  0x35   : > { %s1121_s20 = smov %s1124_s23  ;;  %s1122_s21 = smov %s1128_s24 }
  0x36   :  { %15 = sbr.rel (!%p13_p7) target bundleno = 3 (0x3), region = 101 }

// kernel: squeeze.4
= control target key start
LH: loop header
LB: loop body
LE: loop exit
PB: predicated region body
PF: predicated region fallthrough
CT: control target
= control target key end

     0   :  { %vm11_vm0 = vcmask 23552   ;;  %s599_s10 = smov 119   ;;  %s600_s11 = smov 122   ;;  %s853_s0 = inlined_call_operand.vmem [shape: f32[1,2,4,48], index: 0, kind: input, shape index: {}]   ;;  %s854_s1 = inlined_call_operand.vmem [shape: f32[2,4,4,4,3], index: 1, kind: output, shape index: {}]  }
   0x1   :  { %v551_v0 = vld [vmem:[%s853_s0 + $0x4] sm:$0xf]  ;;  %v8_v1 = vld [vmem:[%s853_s0] sm:$0xf]  ;;  %s598_s0 = smov 125   ;;  %s601_s12 = smov 116  }
   0x2   :  { %7 = vst [vmem:[#allocation1 + $0x8] sm:$0xf] %v551_v0  ;;  %9 = vst [vmem:[#allocation1] sm:$0xf] %v8_v1  ;;  %s602_s13 = smov 113   ;;  %s603_s14 = smov 110  }
   0x3   :  { %s604_s15 = smov 107   ;;  %s605_s16 = smov 104  }
   0x4   :  { %s606_s17 = smov 101   ;;  %s607_s18 = smov 98  }
   0x5   :  { %s608_s19 = smov 95   ;;  %s609_s20 = smov 92  }
   0x6   :  { %s610_s21 = smov 89   ;;  %s611_s22 = smov 86  }
   0x7   :  { %s612_s23 = smov 83  }
   0x9   :  { %v30_v2 = vld.sshfl [vmem:[#allocation1] sm:$0xff pattern:$0xba983210]  }
   0xa   :  { %v10_v3 = vld [vmem:[#allocation1] sm:$0xf]   ;;  %31 = vrot.lane.b32.xlu0 %v30_v2, %s598_s0  ;;  %71 = vrot.lane.b32.xlu1 %v30_v2, %s599_s10  ;;  %v20_v4 = vld [vmem:[#allocation1 + $0x8] sm:$0xf]  }
   0xb   :  { %16 = vst.msk [vmem:[#allocation0 + $0x3e] sm:$0x4] %vm11_vm0, %v10_v3   ;;  %18 = vst.msk [vmem:[#allocation0 + $0x5d] sm:$0x8] %vm11_vm0, %v10_v3  }
   0xc   :  { %12 = vst.msk [vmem:[#allocation0] sm:$0x1] %vm11_vm0, %v10_v3   ;;  %14 = vst.msk [vmem:[#allocation0 + $0x1f] sm:$0x2] %vm11_vm0, %v10_v3  }
   0xd   :  { %23 = vst.msk [vmem:[#allocation0 + $0x80] sm:$0x1] %vm11_vm0, %v20_v4   ;;  %25 = vst.msk [vmem:[#allocation0 + $0x9f] sm:$0x2] %vm11_vm0, %v20_v4  }
   0xe   :  { %29 = vst.msk [vmem:[#allocation0 + $0xdd] sm:$0x8] %vm11_vm0, %v20_v4   ;;  %27 = vst.msk [vmem:[#allocation0 + $0xbe] sm:$0x4] %vm11_vm0, %v20_v4   ;;  %51 = vrot.lane.b32.xlu0 %v30_v2, %s600_s11  ;;  %91 = vrot.lane.b32.xlu1 %v30_v2, %s601_s12 }
  0x12   :  { %111 = vrot.lane.b32.xlu0 %v30_v2, %s602_s13  ;;  %131 = vrot.lane.b32.xlu1 %v30_v2, %s603_s14 }
  0x16   :  { %151 = vrot.lane.b32.xlu0 %v30_v2, %s604_s15  ;;  %171 = vrot.lane.b32.xlu1 %v30_v2, %s605_s16 }
  0x1a   :  { %191 = vrot.lane.b32.xlu0 %v30_v2, %s606_s17  ;;  %211 = vrot.lane.b32.xlu1 %v30_v2, %s607_s18 }
  0x1e   :  { %231 = vrot.lane.b32.xlu0 %v30_v2, %s608_s19  ;;  %251 = vrot.lane.b32.xlu1 %v30_v2, %s609_s20 }
  0x22   :  { %271 = vrot.lane.b32.xlu0 %v30_v2, %s610_s21  ;;  %291 = vrot.lane.b32.xlu1 %v30_v2, %s611_s22 }
  0x26   :  { %311 = vrot.lane.b32.xlu0 %v30_v2, %s612_s23 }
  0x7c   :  { %v32_v5 = vpop.permute.xlu0 %31   ;;  %v72_v6 = vpop.permute.xlu1 %71  }
  0x7d   :  { %35 = vst.msk [vmem:[#allocation0 + $0x1] sm:$0x1] %vm11_vm0, %v32_v5   ;;  %37 = vst.msk [vmem:[#allocation0 + $0x20] sm:$0x2] %vm11_vm0, %v32_v5  }
  0x7e   :  { %39 = vst.msk [vmem:[#allocation0 + $0x3f] sm:$0x4] %vm11_vm0, %v32_v5   ;;  %41 = vst.msk [vmem:[#allocation0 + $0x5e] sm:$0x8] %vm11_vm0, %v32_v5  }
  0x7f   :  { %43 = vst.msk [vmem:[#allocation0 + $0x7d] sm:$0x10] %vm11_vm0, %v32_v5   ;;  %45 = vst.msk [vmem:[#allocation0 + $0x9c] sm:$0x20] %vm11_vm0, %v32_v5  }
  0x80   :  { %47 = vst.msk [vmem:[#allocation0 + $0xbb] sm:$0x40] %vm11_vm0, %v32_v5   ;;  %49 = vst.msk [vmem:[#allocation0 + $0xda] sm:$0x80] %vm11_vm0, %v32_v5   ;;  %v52_v7 = vpop.permute.xlu0 %51   ;;  %v92_v8 = vpop.permute.xlu1 %91  }
  0x81   :  { %75 = vst.msk [vmem:[#allocation0 + $0x3] sm:$0x1] %vm11_vm0, %v72_v6   ;;  %77 = vst.msk [vmem:[#allocation0 + $0x22] sm:$0x2] %vm11_vm0, %v72_v6  }
  0x82   :  { %79 = vst.msk [vmem:[#allocation0 + $0x41] sm:$0x4] %vm11_vm0, %v72_v6   ;;  %81 = vst.msk [vmem:[#allocation0 + $0x60] sm:$0x8] %vm11_vm0, %v72_v6  }
  0x83   :  { %83 = vst.msk [vmem:[#allocation0 + $0x7f] sm:$0x10] %vm11_vm0, %v72_v6   ;;  %85 = vst.msk [vmem:[#allocation0 + $0x9e] sm:$0x20] %vm11_vm0, %v72_v6  }
  0x84   :  { %87 = vst.msk [vmem:[#allocation0 + $0xbd] sm:$0x40] %vm11_vm0, %v72_v6   ;;  %89 = vst.msk [vmem:[#allocation0 + $0xdc] sm:$0x80] %vm11_vm0, %v72_v6   ;;  %v112_v9 = vpop.permute.xlu0 %111   ;;  %v132_v10 = vpop.permute.xlu1 %131  }
  0x85   :  { %55 = vst.msk [vmem:[#allocation0 + $0x2] sm:$0x1] %vm11_vm0, %v52_v7   ;;  %57 = vst.msk [vmem:[#allocation0 + $0x21] sm:$0x2] %vm11_vm0, %v52_v7  }
  0x86   :  { %59 = vst.msk [vmem:[#allocation0 + $0x40] sm:$0x4] %vm11_vm0, %v52_v7   ;;  %61 = vst.msk [vmem:[#allocation0 + $0x5f] sm:$0x8] %vm11_vm0, %v52_v7  }
  0x87   :  { %63 = vst.msk [vmem:[#allocation0 + $0x7e] sm:$0x10] %vm11_vm0, %v52_v7   ;;  %65 = vst.msk [vmem:[#allocation0 + $0x9d] sm:$0x20] %vm11_vm0, %v52_v7  }
  0x88   :  { %67 = vst.msk [vmem:[#allocation0 + $0xbc] sm:$0x40] %vm11_vm0, %v52_v7   ;;  %69 = vst.msk [vmem:[#allocation0 + $0xdb] sm:$0x80] %vm11_vm0, %v52_v7   ;;  %v152_v14 = vpop.permute.xlu0 %151   ;;  %v172_v15 = vpop.permute.xlu1 %171  }
  0x89   :  { %95 = vst.msk [vmem:[#allocation0 + $0x8] sm:$0x1] %vm11_vm0, %v92_v8   ;;  %97 = vst.msk [vmem:[#allocation0 + $0x27] sm:$0x2] %vm11_vm0, %v92_v8  }
  0x8a   :  { %99 = vst.msk [vmem:[#allocation0 + $0x46] sm:$0x4] %vm11_vm0, %v92_v8   ;;  %101 = vst.msk [vmem:[#allocation0 + $0x65] sm:$0x8] %vm11_vm0, %v92_v8  }
  0x8b   :  { %103 = vst.msk [vmem:[#allocation0 + $0x84] sm:$0x10] %vm11_vm0, %v92_v8   ;;  %105 = vst.msk [vmem:[#allocation0 + $0xa3] sm:$0x20] %vm11_vm0, %v92_v8  }
  0x8c   :  { %107 = vst.msk [vmem:[#allocation0 + $0xc2] sm:$0x40] %vm11_vm0, %v92_v8   ;;  %109 = vst.msk [vmem:[#allocation0 + $0xe1] sm:$0x80] %vm11_vm0, %v92_v8   ;;  %v333_v11 = vld [vmem:[#allocation0] sm:$0xf]  ;;  %v192_v21 = vpop.permute.xlu0 %191   ;;  %v212_v22 = vpop.permute.xlu1 %211  }
  0x8d   :  { %115 = vst.msk [vmem:[#allocation0 + $0x9] sm:$0x1] %vm11_vm0, %v112_v9   ;;  %117 = vst.msk [vmem:[#allocation0 + $0x28] sm:$0x2] %vm11_vm0, %v112_v9   ;;  %v354_v12 = vld [vmem:[#allocation0 + $0x20] sm:$0xf] }
  0x8e   :  { %119 = vst.msk [vmem:[#allocation0 + $0x47] sm:$0x4] %vm11_vm0, %v112_v9   ;;  %121 = vst.msk [vmem:[#allocation0 + $0x66] sm:$0x8] %vm11_vm0, %v112_v9   ;;  %v378_v13 = vld [vmem:[#allocation0 + $0x40] sm:$0xf] }
  0x8f   :  { %123 = vst.msk [vmem:[#allocation0 + $0x85] sm:$0x10] %vm11_vm0, %v112_v9   ;;  %125 = vst.msk [vmem:[#allocation0 + $0xa4] sm:$0x20] %vm11_vm0, %v112_v9   ;;  %v402_v16 = vld [vmem:[#allocation0 + $0x60] sm:$0xf] }
  0x90   :  { %127 = vst.msk [vmem:[#allocation0 + $0xc3] sm:$0x40] %vm11_vm0, %v112_v9   ;;  %129 = vst.msk [vmem:[#allocation0 + $0xe2] sm:$0x80] %vm11_vm0, %v112_v9   ;;  %v426_v17 = vld [vmem:[#allocation0 + $0x80] sm:$0xf]  ;;  %v232_v26 = vpop.permute.xlu0 %231   ;;  %v252_v27 = vpop.permute.xlu1 %251  }
  0x91   :  { %135 = vst.msk [vmem:[#allocation0 + $0xa] sm:$0x1] %vm11_vm0, %v132_v10   ;;  %137 = vst.msk [vmem:[#allocation0 + $0x29] sm:$0x2] %vm11_vm0, %v132_v10   ;;  %v450_v18 = vld [vmem:[#allocation0 + $0xa0] sm:$0xf] }
  0x92   :  { %139 = vst.msk [vmem:[#allocation0 + $0x48] sm:$0x4] %vm11_vm0, %v132_v10   ;;  %141 = vst.msk [vmem:[#allocation0 + $0x67] sm:$0x8] %vm11_vm0, %v132_v10   ;;  %v474_v19 = vld [vmem:[#allocation0 + $0xc0] sm:$0xf] }
  0x93   :  { %143 = vst.msk [vmem:[#allocation0 + $0x86] sm:$0x10] %vm11_vm0, %v132_v10   ;;  %145 = vst.msk [vmem:[#allocation0 + $0xa5] sm:$0x20] %vm11_vm0, %v132_v10   ;;  %v498_v20 = vld [vmem:[#allocation0 + $0xe0] sm:$0xf] }
  0x94   :  { %147 = vst.msk [vmem:[#allocation0 + $0xc4] sm:$0x40] %vm11_vm0, %v132_v10   ;;  %149 = vst.msk [vmem:[#allocation0 + $0xe3] sm:$0x80] %vm11_vm0, %v132_v10   ;;  %v272_v33 = vpop.permute.xlu0 %271   ;;  %v292_v34 = vpop.permute.xlu1 %291  }
  0x95   :  { %335 = vst [vmem:[%s854_s1] sm:$0xf] %v333_v11  ;;  %555 = vst [vmem:[%s854_s1 + $0x10] sm:$0xf] %v354_v12 }
  0x96   :  { %559 = vst [vmem:[%s854_s1 + $0x20] sm:$0xf] %v378_v13  ;;  %155 = vst.msk [vmem:[#allocation0 + $0xb] sm:$0x1] %vm11_vm0, %v152_v14  }
  0x97   :  { %157 = vst.msk [vmem:[#allocation0 + $0x2a] sm:$0x2] %vm11_vm0, %v152_v14   ;;  %159 = vst.msk [vmem:[#allocation0 + $0x49] sm:$0x4] %vm11_vm0, %v152_v14  }
  0x98   :  { %161 = vst.msk [vmem:[#allocation0 + $0x68] sm:$0x8] %vm11_vm0, %v152_v14   ;;  %163 = vst.msk [vmem:[#allocation0 + $0x87] sm:$0x10] %vm11_vm0, %v152_v14   ;;  %v312_v38 = vpop.permute.xlu0 %311  }
  0x99   :  { %165 = vst.msk [vmem:[#allocation0 + $0xa6] sm:$0x20] %vm11_vm0, %v152_v14   ;;  %167 = vst.msk [vmem:[#allocation0 + $0xc5] sm:$0x40] %vm11_vm0, %v152_v14  }
  0x9a   :  { %169 = vst.msk [vmem:[#allocation0 + $0xe4] sm:$0x80] %vm11_vm0, %v152_v14   ;;  %175 = vst.msk [vmem:[#allocation0 + $0x10] sm:$0x1] %vm11_vm0, %v172_v15  }
  0x9b   :  { %177 = vst.msk [vmem:[#allocation0 + $0x2f] sm:$0x2] %vm11_vm0, %v172_v15   ;;  %179 = vst.msk [vmem:[#allocation0 + $0x4e] sm:$0x4] %vm11_vm0, %v172_v15  }
  0x9c   :  { %181 = vst.msk [vmem:[#allocation0 + $0x6d] sm:$0x8] %vm11_vm0, %v172_v15   ;;  %183 = vst.msk [vmem:[#allocation0 + $0x8c] sm:$0x10] %vm11_vm0, %v172_v15  }
  0x9d   :  { %185 = vst.msk [vmem:[#allocation0 + $0xab] sm:$0x20] %vm11_vm0, %v172_v15   ;;  %187 = vst.msk [vmem:[#allocation0 + $0xca] sm:$0x40] %vm11_vm0, %v172_v15   ;;  %v337_v24 = vld [vmem:[#allocation0 + $0x8] sm:$0xf] }
  0x9e   :  { %189 = vst.msk [vmem:[#allocation0 + $0xe9] sm:$0x80] %vm11_vm0, %v172_v15   ;;  %563 = vst [vmem:[%s854_s1 + $0x30] sm:$0xf] %v402_v16  ;;  %v360_v25 = vld [vmem:[#allocation0 + $0x28] sm:$0xf] }
  0x9f   :  { %567 = vst [vmem:[%s854_s1 + $0x40] sm:$0xf] %v426_v17  ;;  %571 = vst [vmem:[%s854_s1 + $0x50] sm:$0xf] %v450_v18  ;;  %v384_v28 = vld [vmem:[#allocation0 + $0x48] sm:$0xf] }
  0xa0   :  { %575 = vst [vmem:[%s854_s1 + $0x60] sm:$0xf] %v474_v19  ;;  %579 = vst [vmem:[%s854_s1 + $0x70] sm:$0xf] %v498_v20  ;;  %v408_v29 = vld [vmem:[#allocation0 + $0x68] sm:$0xf] }
  0xa1   :  { %195 = vst.msk [vmem:[#allocation0 + $0x11] sm:$0x1] %vm11_vm0, %v192_v21   ;;  %197 = vst.msk [vmem:[#allocation0 + $0x30] sm:$0x2] %vm11_vm0, %v192_v21   ;;  %v504_v23 = vld [vmem:[#allocation0 + $0xe8] sm:$0xf] }
  0xa2   :  { %199 = vst.msk [vmem:[#allocation0 + $0x4f] sm:$0x4] %vm11_vm0, %v192_v21   ;;  %201 = vst.msk [vmem:[#allocation0 + $0x6e] sm:$0x8] %vm11_vm0, %v192_v21   ;;  %v432_v30 = vld [vmem:[#allocation0 + $0x88] sm:$0xf] }
  0xa3   :  { %203 = vst.msk [vmem:[#allocation0 + $0x8d] sm:$0x10] %vm11_vm0, %v192_v21   ;;  %205 = vst.msk [vmem:[#allocation0 + $0xac] sm:$0x20] %vm11_vm0, %v192_v21   ;;  %v456_v31 = vld [vmem:[#allocation0 + $0xa8] sm:$0xf] }
  0xa4   :  { %207 = vst.msk [vmem:[#allocation0 + $0xcb] sm:$0x40] %vm11_vm0, %v192_v21   ;;  %209 = vst.msk [vmem:[#allocation0 + $0xea] sm:$0x80] %vm11_vm0, %v192_v21   ;;  %v480_v32 = vld [vmem:[#allocation0 + $0xc8] sm:$0xf] }
  0xa5   :  { %215 = vst.msk [vmem:[#allocation0 + $0x12] sm:$0x1] %vm11_vm0, %v212_v22   ;;  %217 = vst.msk [vmem:[#allocation0 + $0x31] sm:$0x2] %vm11_vm0, %v212_v22  }
  0xa6   :  { %219 = vst.msk [vmem:[#allocation0 + $0x50] sm:$0x4] %vm11_vm0, %v212_v22   ;;  %221 = vst.msk [vmem:[#allocation0 + $0x6f] sm:$0x8] %vm11_vm0, %v212_v22  }
  0xa7   :  { %223 = vst.msk [vmem:[#allocation0 + $0x8e] sm:$0x10] %vm11_vm0, %v212_v22   ;;  %225 = vst.msk [vmem:[#allocation0 + $0xad] sm:$0x20] %vm11_vm0, %v212_v22  }
  0xa8   :  { %227 = vst.msk [vmem:[#allocation0 + $0xcc] sm:$0x40] %vm11_vm0, %v212_v22   ;;  %229 = vst.msk [vmem:[#allocation0 + $0xeb] sm:$0x80] %vm11_vm0, %v212_v22  }
  0xa9   :  { %580 = vst [vmem:[%s854_s1 + $0x74] sm:$0xf] %v504_v23  ;;  %552 = vst [vmem:[%s854_s1 + $0x4] sm:$0xf] %v337_v24 }
  0xaa   :  { %556 = vst [vmem:[%s854_s1 + $0x14] sm:$0xf] %v360_v25  ;;  %235 = vst.msk [vmem:[#allocation0 + $0x13] sm:$0x1] %vm11_vm0, %v232_v26  }
  0xab   :  { %237 = vst.msk [vmem:[#allocation0 + $0x32] sm:$0x2] %vm11_vm0, %v232_v26   ;;  %239 = vst.msk [vmem:[#allocation0 + $0x51] sm:$0x4] %vm11_vm0, %v232_v26  }
  0xac   :  { %241 = vst.msk [vmem:[#allocation0 + $0x70] sm:$0x8] %vm11_vm0, %v232_v26   ;;  %243 = vst.msk [vmem:[#allocation0 + $0x8f] sm:$0x10] %vm11_vm0, %v232_v26  }
  0xad   :  { %245 = vst.msk [vmem:[#allocation0 + $0xae] sm:$0x20] %vm11_vm0, %v232_v26   ;;  %247 = vst.msk [vmem:[#allocation0 + $0xcd] sm:$0x40] %vm11_vm0, %v232_v26  }
  0xae   :  { %249 = vst.msk [vmem:[#allocation0 + $0xec] sm:$0x80] %vm11_vm0, %v232_v26   ;;  %255 = vst.msk [vmem:[#allocation0 + $0x18] sm:$0x1] %vm11_vm0, %v252_v27  }
  0xaf   :  { %257 = vst.msk [vmem:[#allocation0 + $0x37] sm:$0x2] %vm11_vm0, %v252_v27   ;;  %259 = vst.msk [vmem:[#allocation0 + $0x56] sm:$0x4] %vm11_vm0, %v252_v27  }
  0xb0   :  { %261 = vst.msk [vmem:[#allocation0 + $0x75] sm:$0x8] %vm11_vm0, %v252_v27   ;;  %263 = vst.msk [vmem:[#allocation0 + $0x94] sm:$0x10] %vm11_vm0, %v252_v27  }
  0xb1   :  { %265 = vst.msk [vmem:[#allocation0 + $0xb3] sm:$0x20] %vm11_vm0, %v252_v27   ;;  %267 = vst.msk [vmem:[#allocation0 + $0xd2] sm:$0x40] %vm11_vm0, %v252_v27   ;;  %v342_v39 = vld [vmem:[#allocation0 + $0x10] sm:$0xf] }
  0xb2   :  { %269 = vst.msk [vmem:[#allocation0 + $0xf1] sm:$0x80] %vm11_vm0, %v252_v27   ;;  %560 = vst [vmem:[%s854_s1 + $0x24] sm:$0xf] %v384_v28  ;;  %v366_v35 = vld [vmem:[#allocation0 + $0x30] sm:$0xf] }
  0xb3   :  { %564 = vst [vmem:[%s854_s1 + $0x34] sm:$0xf] %v408_v29  ;;  %568 = vst [vmem:[%s854_s1 + $0x44] sm:$0xf] %v432_v30  ;;  %v390_v36 = vld [vmem:[#allocation0 + $0x50] sm:$0xf] }
  0xb4   :  { %572 = vst [vmem:[%s854_s1 + $0x54] sm:$0xf] %v456_v31  ;;  %576 = vst [vmem:[%s854_s1 + $0x64] sm:$0xf] %v480_v32  ;;  %v414_v37 = vld [vmem:[#allocation0 + $0x70] sm:$0xf] }
  0xb5   :  { %275 = vst.msk [vmem:[#allocation0 + $0x19] sm:$0x1] %vm11_vm0, %v272_v33   ;;  %277 = vst.msk [vmem:[#allocation0 + $0x38] sm:$0x2] %vm11_vm0, %v272_v33   ;;  %v438_v40 = vld [vmem:[#allocation0 + $0x90] sm:$0xf] }
  0xb6   :  { %279 = vst.msk [vmem:[#allocation0 + $0x57] sm:$0x4] %vm11_vm0, %v272_v33   ;;  %281 = vst.msk [vmem:[#allocation0 + $0x76] sm:$0x8] %vm11_vm0, %v272_v33   ;;  %v462_v41 = vld [vmem:[#allocation0 + $0xb0] sm:$0xf] }
  0xb7   :  { %283 = vst.msk [vmem:[#allocation0 + $0x95] sm:$0x10] %vm11_vm0, %v272_v33   ;;  %285 = vst.msk [vmem:[#allocation0 + $0xb4] sm:$0x20] %vm11_vm0, %v272_v33   ;;  %v486_v42 = vld [vmem:[#allocation0 + $0xd0] sm:$0xf] }
  0xb8   :  { %287 = vst.msk [vmem:[#allocation0 + $0xd3] sm:$0x40] %vm11_vm0, %v272_v33   ;;  %289 = vst.msk [vmem:[#allocation0 + $0xf2] sm:$0x80] %vm11_vm0, %v272_v33   ;;  %v510_v43 = vld [vmem:[#allocation0 + $0xf0] sm:$0xf] }
  0xb9   :  { %295 = vst.msk [vmem:[#allocation0 + $0x1a] sm:$0x1] %vm11_vm0, %v292_v34   ;;  %297 = vst.msk [vmem:[#allocation0 + $0x39] sm:$0x2] %vm11_vm0, %v292_v34  }
  0xba   :  { %299 = vst.msk [vmem:[#allocation0 + $0x58] sm:$0x4] %vm11_vm0, %v292_v34   ;;  %301 = vst.msk [vmem:[#allocation0 + $0x77] sm:$0x8] %vm11_vm0, %v292_v34  }
  0xbb   :  { %303 = vst.msk [vmem:[#allocation0 + $0x96] sm:$0x10] %vm11_vm0, %v292_v34   ;;  %305 = vst.msk [vmem:[#allocation0 + $0xb5] sm:$0x20] %vm11_vm0, %v292_v34  }
  0xbc   :  { %307 = vst.msk [vmem:[#allocation0 + $0xd4] sm:$0x40] %vm11_vm0, %v292_v34   ;;  %309 = vst.msk [vmem:[#allocation0 + $0xf3] sm:$0x80] %vm11_vm0, %v292_v34  }
  0xbd   :  { %557 = vst [vmem:[%s854_s1 + $0x18] sm:$0xf] %v366_v35  ;;  %561 = vst [vmem:[%s854_s1 + $0x28] sm:$0xf] %v390_v36 }
  0xbe   :  { %565 = vst [vmem:[%s854_s1 + $0x38] sm:$0xf] %v414_v37  ;;  %315 = vst.msk [vmem:[#allocation0 + $0x1b] sm:$0x1] %vm11_vm0, %v312_v38  }
  0xbf   :  { %317 = vst.msk [vmem:[#allocation0 + $0x3a] sm:$0x2] %vm11_vm0, %v312_v38   ;;  %319 = vst.msk [vmem:[#allocation0 + $0x59] sm:$0x4] %vm11_vm0, %v312_v38  }
  0xc0   :  { %321 = vst.msk [vmem:[#allocation0 + $0x78] sm:$0x8] %vm11_vm0, %v312_v38   ;;  %323 = vst.msk [vmem:[#allocation0 + $0x97] sm:$0x10] %vm11_vm0, %v312_v38  }
  0xc1   :  { %325 = vst.msk [vmem:[#allocation0 + $0xb6] sm:$0x20] %vm11_vm0, %v312_v38   ;;  %327 = vst.msk [vmem:[#allocation0 + $0xd5] sm:$0x40] %vm11_vm0, %v312_v38  }
  0xc2   :  { %329 = vst.msk [vmem:[#allocation0 + $0xf4] sm:$0x80] %vm11_vm0, %v312_v38   ;;  %553 = vst [vmem:[%s854_s1 + $0x8] sm:$0xf] %v342_v39 }
  0xc3   :  { %569 = vst [vmem:[%s854_s1 + $0x48] sm:$0xf] %v438_v40  ;;  %573 = vst [vmem:[%s854_s1 + $0x58] sm:$0xf] %v462_v41 }
  0xc4   :  { %577 = vst [vmem:[%s854_s1 + $0x68] sm:$0xf] %v486_v42  ;;  %581 = vst [vmem:[%s854_s1 + $0x78] sm:$0xf] %v510_v43 }
  0xc5   :  { %v348_v49 = vld [vmem:[#allocation0 + $0x18] sm:$0xf] }
  0xc6   :  { %v396_v44 = vld [vmem:[#allocation0 + $0x58] sm:$0xf]  ;;  %554 = vst [vmem:[%s854_s1 + $0xc] sm:$0xf] %v348_v49 }
  0xc7   :  { %v420_v45 = vld [vmem:[#allocation0 + $0x78] sm:$0xf]  ;;  %562 = vst [vmem:[%s854_s1 + $0x2c] sm:$0xf] %v396_v44 }
  0xc8   :  { %v444_v46 = vld [vmem:[#allocation0 + $0x98] sm:$0xf]  ;;  %566 = vst [vmem:[%s854_s1 + $0x3c] sm:$0xf] %v420_v45 }
  0xc9   :  { %570 = vst [vmem:[%s854_s1 + $0x4c] sm:$0xf] %v444_v46  ;;  %v468_v47 = vld [vmem:[#allocation0 + $0xb8] sm:$0xf] }
  0xca   :  { %v516_v48 = vld [vmem:[#allocation0 + $0xf8] sm:$0xf]  ;;  %574 = vst [vmem:[%s854_s1 + $0x5c] sm:$0xf] %v468_v47 }
  0xcb   :  { %582 = vst [vmem:[%s854_s1 + $0x7c] sm:$0xf] %v516_v48  ;;  %v372_v50 = vld [vmem:[#allocation0 + $0x38] sm:$0xf] }
  0xcc   :  { %v492_v51 = vld [vmem:[#allocation0 + $0xd8] sm:$0xf]  ;;  %558 = vst [vmem:[%s854_s1 + $0x1c] sm:$0xf] %v372_v50 }
  0xcd   :  { %578 = vst [vmem:[%s854_s1 + $0x6c] sm:$0xf] %v492_v51 }

// kernel: reverse.1
= control target key start
LH: loop header
LB: loop body
LE: loop exit
PB: predicated region body
PF: predicated region fallthrough
CT: control target
= control target key end

     0   :  { %s1352_s0 = inlined_call_operand.vmem [shape: f32[2,4,16,16,7], index: 0, kind: input, shape index: {}]   ;;  %s1353_s1 = inlined_call_operand.vmem [shape: f32[2,4,16,16,7], index: 1, kind: output, shape index: {}]  }
   0x1   :  { %v448_v0 = vld [vmem:[%s1352_s0 + $0x60] sm:$0xff]  ;;  %v451_v2 = vld [vmem:[%s1352_s0 + $0xd0] sm:$0xff]  ;;  %v558_v56 = vld [vmem:[%s1352_s0 + $0x68] sm:$0xff] }
   0x2   :  { %v449_v1 = vld [vmem:[%s1352_s0 + $0x220] sm:$0xff]  ;;  %4 = vst [vmem:[%s1353_s1] sm:$0xff] %v448_v0  ;;  %452 = vst [vmem:[%s1353_s1 + $0x70] sm:$0xff] %v451_v2  ;;  %v453_v3 = vld [vmem:[%s1352_s0 + $0x290] sm:$0xff] }
   0x3   :  { %450 = vst [vmem:[%s1353_s1 + $0x1c0] sm:$0xff] %v449_v1  ;;  %v455_v4 = vld [vmem:[%s1352_s0 + $0x140] sm:$0xff]  ;;  %454 = vst [vmem:[%s1353_s1 + $0x230] sm:$0xff] %v453_v3  ;;  %v459_v6 = vld [vmem:[%s1352_s0 + $0x1b0] sm:$0xff] }
   0x4   :  { %v457_v5 = vld [vmem:[%s1352_s0 + $0x300] sm:$0xff]  ;;  %456 = vst [vmem:[%s1353_s1 + $0xe0] sm:$0xff] %v455_v4  ;;  %v461_v7 = vld [vmem:[%s1352_s0 + $0x370] sm:$0xff]  ;;  %460 = vst [vmem:[%s1353_s1 + $0x150] sm:$0xff] %v459_v6 }
   0x5   :  { %458 = vst [vmem:[%s1353_s1 + $0x2a0] sm:$0xff] %v457_v5  ;;  %v463_v8 = vld [vmem:[%s1352_s0 + $0x50] sm:$0xff]  ;;  %462 = vst [vmem:[%s1353_s1 + $0x310] sm:$0xff] %v461_v7  ;;  %v467_v10 = vld [vmem:[%s1352_s0 + $0xc0] sm:$0xff] }
   0x6   :  { %464 = vst [vmem:[%s1353_s1 + $0x10] sm:$0xff] %v463_v8  ;;  %v465_v9 = vld [vmem:[%s1352_s0 + $0x210] sm:$0xff]  ;;  %v469_v11 = vld [vmem:[%s1352_s0 + $0x280] sm:$0xff]  ;;  %468 = vst [vmem:[%s1353_s1 + $0x80] sm:$0xff] %v467_v10 }
   0x7   :  { %466 = vst [vmem:[%s1353_s1 + $0x1d0] sm:$0xff] %v465_v9  ;;  %470 = vst [vmem:[%s1353_s1 + $0x240] sm:$0xff] %v469_v11  ;;  %v471_v12 = vld [vmem:[%s1352_s0 + $0x130] sm:$0xff]  ;;  %v475_v14 = vld [vmem:[%s1352_s0 + $0x1a0] sm:$0xff] }
   0x8   :  { %v473_v13 = vld [vmem:[%s1352_s0 + $0x2f0] sm:$0xff]  ;;  %472 = vst [vmem:[%s1353_s1 + $0xf0] sm:$0xff] %v471_v12  ;;  %476 = vst [vmem:[%s1353_s1 + $0x160] sm:$0xff] %v475_v14  ;;  %v477_v15 = vld [vmem:[%s1352_s0 + $0x360] sm:$0xff] }
   0x9   :  { %474 = vst [vmem:[%s1353_s1 + $0x2b0] sm:$0xff] %v473_v13  ;;  %v479_v16 = vld [vmem:[%s1352_s0 + $0x40] sm:$0xff]  ;;  %478 = vst [vmem:[%s1353_s1 + $0x320] sm:$0xff] %v477_v15  ;;  %v483_v18 = vld [vmem:[%s1352_s0 + $0xb0] sm:$0xff] }
   0xa   :  { %v481_v17 = vld [vmem:[%s1352_s0 + $0x200] sm:$0xff]  ;;  %480 = vst [vmem:[%s1353_s1 + $0x20] sm:$0xff] %v479_v16  ;;  %v485_v19 = vld [vmem:[%s1352_s0 + $0x270] sm:$0xff]  ;;  %484 = vst [vmem:[%s1353_s1 + $0x90] sm:$0xff] %v483_v18 }
   0xb   :  { %482 = vst [vmem:[%s1353_s1 + $0x1e0] sm:$0xff] %v481_v17  ;;  %v487_v20 = vld [vmem:[%s1352_s0 + $0x120] sm:$0xff]  ;;  %486 = vst [vmem:[%s1353_s1 + $0x250] sm:$0xff] %v485_v19  ;;  %v491_v22 = vld [vmem:[%s1352_s0 + $0x190] sm:$0xff] }
   0xc   :  { %488 = vst [vmem:[%s1353_s1 + $0x100] sm:$0xff] %v487_v20  ;;  %v489_v21 = vld [vmem:[%s1352_s0 + $0x2e0] sm:$0xff]  ;;  %v493_v23 = vld [vmem:[%s1352_s0 + $0x350] sm:$0xff]  ;;  %492 = vst [vmem:[%s1353_s1 + $0x170] sm:$0xff] %v491_v22 }
   0xd   :  { %490 = vst [vmem:[%s1353_s1 + $0x2c0] sm:$0xff] %v489_v21  ;;  %494 = vst [vmem:[%s1353_s1 + $0x330] sm:$0xff] %v493_v23  ;;  %v495_v24 = vld [vmem:[%s1352_s0 + $0x30] sm:$0xff]  ;;  %v499_v26 = vld [vmem:[%s1352_s0 + $0xa0] sm:$0xff] }
   0xe   :  { %v497_v25 = vld [vmem:[%s1352_s0 + $0x1f0] sm:$0xff]  ;;  %496 = vst [vmem:[%s1353_s1 + $0x30] sm:$0xff] %v495_v24  ;;  %500 = vst [vmem:[%s1353_s1 + $0xa0] sm:$0xff] %v499_v26  ;;  %v501_v27 = vld [vmem:[%s1352_s0 + $0x260] sm:$0xff] }
   0xf   :  { %498 = vst [vmem:[%s1353_s1 + $0x1f0] sm:$0xff] %v497_v25  ;;  %v503_v28 = vld [vmem:[%s1352_s0 + $0x110] sm:$0xff]  ;;  %502 = vst [vmem:[%s1353_s1 + $0x260] sm:$0xff] %v501_v27  ;;  %v507_v30 = vld [vmem:[%s1352_s0 + $0x180] sm:$0xff] }
  0x10   :  { %v505_v29 = vld [vmem:[%s1352_s0 + $0x2d0] sm:$0xff]  ;;  %504 = vst [vmem:[%s1353_s1 + $0x110] sm:$0xff] %v503_v28  ;;  %v509_v31 = vld [vmem:[%s1352_s0 + $0x340] sm:$0xff]  ;;  %508 = vst [vmem:[%s1353_s1 + $0x180] sm:$0xff] %v507_v30 }
  0x11   :  { %506 = vst [vmem:[%s1353_s1 + $0x2d0] sm:$0xff] %v505_v29  ;;  %v511_v32 = vld [vmem:[%s1352_s0 + $0x20] sm:$0xff]  ;;  %510 = vst [vmem:[%s1353_s1 + $0x340] sm:$0xff] %v509_v31  ;;  %v515_v34 = vld [vmem:[%s1352_s0 + $0x90] sm:$0xff] }
  0x12   :  { %512 = vst [vmem:[%s1353_s1 + $0x40] sm:$0xff] %v511_v32  ;;  %v513_v33 = vld [vmem:[%s1352_s0 + $0x1e0] sm:$0xff]  ;;  %v517_v35 = vld [vmem:[%s1352_s0 + $0x250] sm:$0xff]  ;;  %516 = vst [vmem:[%s1353_s1 + $0xb0] sm:$0xff] %v515_v34 }
  0x13   :  { %514 = vst [vmem:[%s1353_s1 + $0x200] sm:$0xff] %v513_v33  ;;  %518 = vst [vmem:[%s1353_s1 + $0x270] sm:$0xff] %v517_v35  ;;  %v519_v36 = vld [vmem:[%s1352_s0 + $0x100] sm:$0xff]  ;;  %v523_v38 = vld [vmem:[%s1352_s0 + $0x170] sm:$0xff] }
  0x14   :  { %v521_v37 = vld [vmem:[%s1352_s0 + $0x2c0] sm:$0xff]  ;;  %520 = vst [vmem:[%s1353_s1 + $0x120] sm:$0xff] %v519_v36  ;;  %524 = vst [vmem:[%s1353_s1 + $0x190] sm:$0xff] %v523_v38  ;;  %v525_v39 = vld [vmem:[%s1352_s0 + $0x330] sm:$0xff] }
  0x15   :  { %522 = vst [vmem:[%s1353_s1 + $0x2e0] sm:$0xff] %v521_v37  ;;  %v527_v40 = vld [vmem:[%s1352_s0 + $0x10] sm:$0xff]  ;;  %526 = vst [vmem:[%s1353_s1 + $0x350] sm:$0xff] %v525_v39  ;;  %v531_v42 = vld [vmem:[%s1352_s0 + $0x80] sm:$0xff] }
  0x16   :  { %v529_v41 = vld [vmem:[%s1352_s0 + $0x1d0] sm:$0xff]  ;;  %528 = vst [vmem:[%s1353_s1 + $0x50] sm:$0xff] %v527_v40  ;;  %v533_v43 = vld [vmem:[%s1352_s0 + $0x240] sm:$0xff]  ;;  %532 = vst [vmem:[%s1353_s1 + $0xc0] sm:$0xff] %v531_v42 }
  0x17   :  { %530 = vst [vmem:[%s1353_s1 + $0x210] sm:$0xff] %v529_v41  ;;  %v535_v44 = vld [vmem:[%s1352_s0 + $0xf0] sm:$0xff]  ;;  %534 = vst [vmem:[%s1353_s1 + $0x280] sm:$0xff] %v533_v43  ;;  %v539_v46 = vld [vmem:[%s1352_s0 + $0x160] sm:$0xff] }
  0x18   :  { %536 = vst [vmem:[%s1353_s1 + $0x130] sm:$0xff] %v535_v44  ;;  %v537_v45 = vld [vmem:[%s1352_s0 + $0x2b0] sm:$0xff]  ;;  %v541_v47 = vld [vmem:[%s1352_s0 + $0x320] sm:$0xff]  ;;  %540 = vst [vmem:[%s1353_s1 + $0x1a0] sm:$0xff] %v539_v46 }
  0x19   :  { %538 = vst [vmem:[%s1353_s1 + $0x2f0] sm:$0xff] %v537_v45  ;;  %542 = vst [vmem:[%s1353_s1 + $0x360] sm:$0xff] %v541_v47  ;;  %v193_v48 = vld [vmem:[%s1352_s0] sm:$0xff]  ;;  %v546_v50 = vld [vmem:[%s1352_s0 + $0x70] sm:$0xff] }
  0x1a   :  { %v544_v49 = vld [vmem:[%s1352_s0 + $0x1c0] sm:$0xff]  ;;  %543 = vst [vmem:[%s1353_s1 + $0x60] sm:$0xff] %v193_v48  ;;  %547 = vst [vmem:[%s1353_s1 + $0xd0] sm:$0xff] %v546_v50  ;;  %v548_v51 = vld [vmem:[%s1352_s0 + $0x230] sm:$0xff] }
  0x1b   :  { %545 = vst [vmem:[%s1353_s1 + $0x220] sm:$0xff] %v544_v49  ;;  %v550_v52 = vld [vmem:[%s1352_s0 + $0xe0] sm:$0xff]  ;;  %549 = vst [vmem:[%s1353_s1 + $0x290] sm:$0xff] %v548_v51  ;;  %v554_v54 = vld [vmem:[%s1352_s0 + $0x150] sm:$0xff] }
  0x1c   :  { %v552_v53 = vld [vmem:[%s1352_s0 + $0x2a0] sm:$0xff]  ;;  %551 = vst [vmem:[%s1353_s1 + $0x140] sm:$0xff] %v550_v52  ;;  %v556_v55 = vld [vmem:[%s1352_s0 + $0x310] sm:$0xff]  ;;  %555 = vst [vmem:[%s1353_s1 + $0x1b0] sm:$0xff] %v554_v54 }
  0x1d   :  { %553 = vst [vmem:[%s1353_s1 + $0x300] sm:$0xff] %v552_v53  ;;  %557 = vst [vmem:[%s1353_s1 + $0x370] sm:$0xff] %v556_v55  ;;  %v560_v57 = vld [vmem:[%s1352_s0 + $0x228] sm:$0xff]  ;;  %v562_v58 = vld [vmem:[%s1352_s0 + $0xd8] sm:$0xff] }
  0x1e   :  { %559 = vst [vmem:[%s1353_s1 + $0x8] sm:$0xff] %v558_v56  ;;  %v564_v59 = vld [vmem:[%s1352_s0 + $0x298] sm:$0xff]  ;;  %561 = vst [vmem:[%s1353_s1 + $0x1c8] sm:$0xff] %v560_v57  ;;  %v566_v60 = vld [vmem:[%s1352_s0 + $0x148] sm:$0xff] }
  0x1f   :  { %563 = vst [vmem:[%s1353_s1 + $0x78] sm:$0xff] %v562_v58  ;;  %565 = vst [vmem:[%s1353_s1 + $0x238] sm:$0xff] %v564_v59  ;;  %v568_v61 = vld [vmem:[%s1352_s0 + $0x308] sm:$0xff]  ;;  %v570_v62 = vld [vmem:[%s1352_s0 + $0x1b8] sm:$0xff] }
  0x20   :  { %567 = vst [vmem:[%s1353_s1 + $0xe8] sm:$0xff] %v566_v60  ;;  %569 = vst [vmem:[%s1353_s1 + $0x2a8] sm:$0xff] %v568_v61  ;;  %v572_v63 = vld [vmem:[%s1352_s0 + $0x378] sm:$0xff]  ;;  %v578_v2 = vld [vmem:[%s1352_s0 + $0xc8] sm:$0xff] }
  0x21   :  { %571 = vst [vmem:[%s1353_s1 + $0x158] sm:$0xff] %v570_v62  ;;  %v574_v0 = vld [vmem:[%s1352_s0 + $0x58] sm:$0xff]  ;;  %573 = vst [vmem:[%s1353_s1 + $0x318] sm:$0xff] %v572_v63  ;;  %v580_v3 = vld [vmem:[%s1352_s0 + $0x288] sm:$0xff] }
  0x22   :  { %v576_v1 = vld [vmem:[%s1352_s0 + $0x218] sm:$0xff]  ;;  %575 = vst [vmem:[%s1353_s1 + $0x18] sm:$0xff] %v574_v0  ;;  %579 = vst [vmem:[%s1353_s1 + $0x88] sm:$0xff] %v578_v2  ;;  %v586_v6 = vld [vmem:[%s1352_s0 + $0x1a8] sm:$0xff] }
  0x23   :  { %577 = vst [vmem:[%s1353_s1 + $0x1d8] sm:$0xff] %v576_v1  ;;  %v582_v4 = vld [vmem:[%s1352_s0 + $0x138] sm:$0xff]  ;;  %581 = vst [vmem:[%s1353_s1 + $0x248] sm:$0xff] %v580_v3  ;;  %v588_v7 = vld [vmem:[%s1352_s0 + $0x368] sm:$0xff] }
  0x24   :  { %583 = vst [vmem:[%s1353_s1 + $0xf8] sm:$0xff] %v582_v4  ;;  %v584_v5 = vld [vmem:[%s1352_s0 + $0x2f8] sm:$0xff]  ;;  %587 = vst [vmem:[%s1353_s1 + $0x168] sm:$0xff] %v586_v6  ;;  %v590_v8 = vld [vmem:[%s1352_s0 + $0x48] sm:$0xff] }
  0x25   :  { %585 = vst [vmem:[%s1353_s1 + $0x2b8] sm:$0xff] %v584_v5  ;;  %589 = vst [vmem:[%s1353_s1 + $0x328] sm:$0xff] %v588_v7  ;;  %v592_v9 = vld [vmem:[%s1352_s0 + $0x208] sm:$0xff]  ;;  %v594_v10 = vld [vmem:[%s1352_s0 + $0xb8] sm:$0xff] }
  0x26   :  { %591 = vst [vmem:[%s1353_s1 + $0x28] sm:$0xff] %v590_v8  ;;  %593 = vst [vmem:[%s1353_s1 + $0x1e8] sm:$0xff] %v592_v9  ;;  %v596_v11 = vld [vmem:[%s1352_s0 + $0x278] sm:$0xff]  ;;  %v598_v12 = vld [vmem:[%s1352_s0 + $0x128] sm:$0xff] }
  0x27   :  { %595 = vst [vmem:[%s1353_s1 + $0x98] sm:$0xff] %v594_v10  ;;  %v600_v13 = vld [vmem:[%s1352_s0 + $0x2e8] sm:$0xff]  ;;  %597 = vst [vmem:[%s1353_s1 + $0x258] sm:$0xff] %v596_v11  ;;  %v602_v14 = vld [vmem:[%s1352_s0 + $0x198] sm:$0xff] }
  0x28   :  { %599 = vst [vmem:[%s1353_s1 + $0x108] sm:$0xff] %v598_v12  ;;  %601 = vst [vmem:[%s1353_s1 + $0x2c8] sm:$0xff] %v600_v13  ;;  %v604_v15 = vld [vmem:[%s1352_s0 + $0x358] sm:$0xff]  ;;  %v610_v18 = vld [vmem:[%s1352_s0 + $0xa8] sm:$0xff] }
  0x29   :  { %v606_v16 = vld [vmem:[%s1352_s0 + $0x38] sm:$0xff]  ;;  %603 = vst [vmem:[%s1353_s1 + $0x178] sm:$0xff] %v602_v14  ;;  %605 = vst [vmem:[%s1353_s1 + $0x338] sm:$0xff] %v604_v15  ;;  %v612_v19 = vld [vmem:[%s1352_s0 + $0x268] sm:$0xff] }
  0x2a   :  { %607 = vst [vmem:[%s1353_s1 + $0x38] sm:$0xff] %v606_v16  ;;  %v608_v17 = vld [vmem:[%s1352_s0 + $0x1f8] sm:$0xff]  ;;  %611 = vst [vmem:[%s1353_s1 + $0xa8] sm:$0xff] %v610_v18  ;;  %v618_v22 = vld [vmem:[%s1352_s0 + $0x188] sm:$0xff] }
  0x2b   :  { %609 = vst [vmem:[%s1353_s1 + $0x1f8] sm:$0xff] %v608_v17  ;;  %613 = vst [vmem:[%s1353_s1 + $0x268] sm:$0xff] %v612_v19  ;;  %v614_v20 = vld [vmem:[%s1352_s0 + $0x118] sm:$0xff]  ;;  %v620_v23 = vld [vmem:[%s1352_s0 + $0x348] sm:$0xff] }
  0x2c   :  { %v616_v21 = vld [vmem:[%s1352_s0 + $0x2d8] sm:$0xff]  ;;  %615 = vst [vmem:[%s1353_s1 + $0x118] sm:$0xff] %v614_v20  ;;  %619 = vst [vmem:[%s1353_s1 + $0x188] sm:$0xff] %v618_v22  ;;  %v622_v24 = vld [vmem:[%s1352_s0 + $0x28] sm:$0xff] }
  0x2d   :  { %617 = vst [vmem:[%s1353_s1 + $0x2d8] sm:$0xff] %v616_v21  ;;  %v624_v25 = vld [vmem:[%s1352_s0 + $0x1e8] sm:$0xff]  ;;  %621 = vst [vmem:[%s1353_s1 + $0x348] sm:$0xff] %v620_v23  ;;  %v626_v26 = vld [vmem:[%s1352_s0 + $0x98] sm:$0xff] }
  0x2e   :  { %623 = vst [vmem:[%s1353_s1 + $0x48] sm:$0xff] %v622_v24  ;;  %625 = vst [vmem:[%s1353_s1 + $0x208] sm:$0xff] %v624_v25  ;;  %v628_v27 = vld [vmem:[%s1352_s0 + $0x258] sm:$0xff]  ;;  %v630_v28 = vld [vmem:[%s1352_s0 + $0x108] sm:$0xff] }
  0x2f   :  { %627 = vst [vmem:[%s1353_s1 + $0xb8] sm:$0xff] %v626_v26  ;;  %629 = vst [vmem:[%s1353_s1 + $0x278] sm:$0xff] %v628_v27  ;;  %v632_v29 = vld [vmem:[%s1352_s0 + $0x2c8] sm:$0xff]  ;;  %v634_v30 = vld [vmem:[%s1352_s0 + $0x178] sm:$0xff] }
  0x30   :  { %631 = vst [vmem:[%s1353_s1 + $0x128] sm:$0xff] %v630_v28  ;;  %v636_v31 = vld [vmem:[%s1352_s0 + $0x338] sm:$0xff]  ;;  %633 = vst [vmem:[%s1353_s1 + $0x2e8] sm:$0xff] %v632_v29  ;;  %v642_v34 = vld [vmem:[%s1352_s0 + $0x88] sm:$0xff] }
  0x31   :  { %635 = vst [vmem:[%s1353_s1 + $0x198] sm:$0xff] %v634_v30  ;;  %637 = vst [vmem:[%s1353_s1 + $0x358] sm:$0xff] %v636_v31  ;;  %v638_v32 = vld [vmem:[%s1352_s0 + $0x18] sm:$0xff]  ;;  %v644_v35 = vld [vmem:[%s1352_s0 + $0x248] sm:$0xff] }
  0x32   :  { %v640_v33 = vld [vmem:[%s1352_s0 + $0x1d8] sm:$0xff]  ;;  %639 = vst [vmem:[%s1353_s1 + $0x58] sm:$0xff] %v638_v32  ;;  %643 = vst [vmem:[%s1353_s1 + $0xc8] sm:$0xff] %v642_v34  ;;  %v650_v38 = vld [vmem:[%s1352_s0 + $0x168] sm:$0xff] }
  0x33   :  { %641 = vst [vmem:[%s1353_s1 + $0x218] sm:$0xff] %v640_v33  ;;  %v646_v36 = vld [vmem:[%s1352_s0 + $0xf8] sm:$0xff]  ;;  %645 = vst [vmem:[%s1353_s1 + $0x288] sm:$0xff] %v644_v35  ;;  %v652_v39 = vld [vmem:[%s1352_s0 + $0x328] sm:$0xff] }
  0x34   :  { %v648_v37 = vld [vmem:[%s1352_s0 + $0x2b8] sm:$0xff]  ;;  %647 = vst [vmem:[%s1353_s1 + $0x138] sm:$0xff] %v646_v36  ;;  %v654_v40 = vld [vmem:[%s1352_s0 + $0x8] sm:$0xff]  ;;  %651 = vst [vmem:[%s1353_s1 + $0x1a8] sm:$0xff] %v650_v38 }
  0x35   :  { %649 = vst [vmem:[%s1353_s1 + $0x2f8] sm:$0xff] %v648_v37  ;;  %653 = vst [vmem:[%s1353_s1 + $0x368] sm:$0xff] %v652_v39  ;;  %v656_v41 = vld [vmem:[%s1352_s0 + $0x1c8] sm:$0xff]  ;;  %v658_v42 = vld [vmem:[%s1352_s0 + $0x78] sm:$0xff] }
  0x36   :  { %655 = vst [vmem:[%s1353_s1 + $0x68] sm:$0xff] %v654_v40  ;;  %v660_v43 = vld [vmem:[%s1352_s0 + $0x238] sm:$0xff]  ;;  %657 = vst [vmem:[%s1353_s1 + $0x228] sm:$0xff] %v656_v41  ;;  %v662_v44 = vld [vmem:[%s1352_s0 + $0xe8] sm:$0xff] }
  0x37   :  { %659 = vst [vmem:[%s1353_s1 + $0xd8] sm:$0xff] %v658_v42  ;;  %661 = vst [vmem:[%s1353_s1 + $0x298] sm:$0xff] %v660_v43  ;;  %v664_v45 = vld [vmem:[%s1352_s0 + $0x2a8] sm:$0xff]  ;;  %v666_v46 = vld [vmem:[%s1352_s0 + $0x158] sm:$0xff] }
  0x38   :  { %663 = vst [vmem:[%s1353_s1 + $0x148] sm:$0xff] %v662_v44  ;;  %665 = vst [vmem:[%s1353_s1 + $0x308] sm:$0xff] %v664_v45  ;;  %v668_v47 = vld [vmem:[%s1352_s0 + $0x318] sm:$0xff] }
  0x39   :  { %667 = vst [vmem:[%s1353_s1 + $0x1b8] sm:$0xff] %v666_v46  ;;  %669 = vst [vmem:[%s1353_s1 + $0x378] sm:$0xff] %v668_v47 }

</bundles_post_ra>
